<compile_context>
chip_gen: v6e
topology: v6e:2x2x1
jax: 0.10.0
libtpu: 0.0.40
codegen_flags: <defaults>
</compile_context>

<pallas_src>
import functools

import jax
import jax.numpy as jnp
from jax.experimental import pallas as pl
from jax.experimental.pallas import tpu as pltpu


def _round_up(x, m):
    return ((x + m - 1) // m) * m


# -----------------------------------------------------------------------------
# Fused kernel: all LSTM layers + FC head in one invocation (no grid).
# -----------------------------------------------------------------------------
def _rnn_lstm_fc_kernel(x_ref, *args, num_layers, batch, seq_len, gate_width):
    """args = [wih_0, whh_0, b_0, ..., wih_{L-1}, whh_{L-1}, b_{L-1},
               fc_w, fc_b, out_ref, seq_buf_0[, seq_buf_1]]

    x_ref   : (T*B, D)     bf16, time-major flattened input
    wih_l   : (Din_l, 4Hg) bf16, W_ih^T with the 0.5 sigmoid pre-scale folded in
    whh_l   : (Hg, 4Hg)    bf16, W_hh^T with the 0.5 sigmoid pre-scale folded in
    b_l     : (1, 4Hg)     f32,  (b_ih + b_hh), pre-scaled likewise
    fc_w    : (1, Hg)      f32
    fc_b    : (1, 1)       f32
    out_ref : (B, 1)       f32, final model output
    seq_buf : (T*B, Hg)    bf16 VMEM, inter-layer activations (never touch HBM)
    """
    nw = 3 * num_layers
    w_refs = args[:nw]
    fcw_ref = args[nw]
    fcb_ref = args[nw + 1]
    out_ref = args[nw + 2]
    seq_bufs = args[nw + 3:]

    B, T, Hg = batch, seq_len, gate_width

    cur2d = x_ref[...]                                     # (T*B, Din) bf16

    h = None
    for l in range(num_layers):
        wih = w_refs[3 * l][...]                           # (Din, 4Hg) bf16
        whh = w_refs[3 * l + 1][...]                       # (Hg, 4Hg)  bf16
        bias = w_refs[3 * l + 2][...]                      # (1, 4Hg)   f32

        # Hoisted input projection: one bf16 MXU matmul (f32 accumulation) for the
        # whole sequence; only h_{t-1} @ W_hh^T stays on the serial recurrence path.
        xg = jnp.dot(cur2d, wih, preferred_element_type=jnp.float32) + bias  # (T*B,4Hg)

        h = jnp.zeros((B, Hg), jnp.float32)
        c = jnp.zeros((B, Hg), jnp.float32)

        write_seq = (l + 1) < num_layers                   # last layer only needs h_T
        dst = seq_bufs[l % len(seq_bufs)] if write_seq else None

        # Statically unrolled recurrence (T is a small compile-time constant).
        for t in range(T):
            gates = xg[t * B:(t + 1) * B, :] + jnp.dot(
                h.astype(jnp.bfloat16), whh, preferred_element_type=jnp.float32)
            # Fused nonlinearity: i/f/o rows already carry the 0.5 pre-scale, so
            # sigmoid(z) = 0.5*tanh(z/2) + 0.5 and a SINGLE tanh covers all 4 gates.
            tg = jnp.tanh(gates)                           # (B, 4Hg), one EUP launch
            i = 0.5 * tg[:, 0 * Hg:1 * Hg] + 0.5
            f = 0.5 * tg[:, 1 * Hg:2 * Hg] + 0.5
            g = tg[:, 2 * Hg:3 * Hg]
            o = 0.5 * tg[:, 3 * Hg:4 * Hg] + 0.5
            c = f * c + i * g
            h = o * jnp.tanh(c)                            # 2nd (and last) EUP launch
            if write_seq:
                dst[t * B:(t + 1) * B, :] = h.astype(dst.dtype)

        if write_seq:
            cur2d = dst[...]                               # feeds next layer's matmul

    # Fused FC head (hidden_dim -> 1): VPU multiply + lane reduction, single (B,1)
    # HBM write for the whole model.
    out_ref[...] = jnp.sum(h * fcw_ref[...], axis=-1, keepdims=True) + fcb_ref[...]


# -----------------------------------------------------------------------------
# Wrapper: pack/pad weights, fold sigmoid pre-scale, launch the fused kernel.
# -----------------------------------------------------------------------------
def _prepare_params(params, H):
    """Returns gate width Hg, flat per-layer [wih^T, whh^T, b] list, fc_w, fc_b.

    If 4*H <= 128 the gates stay packed (Hg = H, no padding).  Otherwise each gate
    is zero-padded to a 128-lane multiple (padded lanes provably stay exactly 0).
    The 0.5 pre-scale for sigmoid-via-tanh is folded into the i/f/o rows here.
    """
    Hg = H if 4 * H <= 128 else _round_up(H, 128)
    gate_scale = (0.5, 0.5, 1.0, 0.5)                      # i, f, g(tanh), o

    def pack_gate_rows(w):                                 # (4H, X) -> (4Hg, X)
        parts = []
        for k in range(4):
            gk = w[k * H:(k + 1) * H] * gate_scale[k]
            if Hg > H:
                gk = jnp.pad(gk, ((0, Hg - H), (0, 0)))
            parts.append(gk)
        return jnp.concatenate(parts, axis=0)

    flat = []
    for l, layer in enumerate(params["lstm"]):
        w_ih = layer["w_ih"].astype(jnp.float32)           # (4H, Din)
        w_hh = layer["w_hh"].astype(jnp.float32)           # (4H, H)
        bias = (layer["b_ih"] + layer["b_hh"]).astype(jnp.float32)  # (4H,)

        w_ih_p = pack_gate_rows(w_ih)                      # (4Hg, Din)
        if l > 0 and Hg > H:                               # layer>=1 input width = Hg
            w_ih_p = jnp.pad(w_ih_p, ((0, 0), (0, Hg - H)))
        w_hh_p = pack_gate_rows(w_hh)                      # (4Hg, H)
        if Hg > H:
            w_hh_p = jnp.pad(w_hh_p, ((0, 0), (0, Hg - H)))
        b_p = pack_gate_rows(bias.reshape(4 * H, 1)).reshape(1, 4 * Hg)

        flat += [w_ih_p.T.astype(jnp.bfloat16),            # (Din, 4Hg) bf16
                 w_hh_p.T.astype(jnp.bfloat16),            # (Hg, 4Hg)  bf16
                 b_p]                                      # (1, 4Hg)   f32

    fc_w = params["fc_w"].astype(jnp.float32)
    if Hg > H:
        fc_w = jnp.pad(fc_w, ((0, 0), (0, Hg - H)))        # (1, Hg)
    fc_b = params["fc_b"].astype(jnp.float32).reshape(1, 1)
    return Hg, flat, fc_w, fc_b


def rnn_model_forward(x_btd, params):
    """Pallas forward mirroring RNNModel.forward (rnn_type='LSTM'). x: (B,T,D) -> (B,1)."""
    x = x_btd.astype(jnp.float32)
    B, T, D = x.shape
    H = params["lstm"][0]["w_hh"].shape[1]
    L = len(params["lstm"])

    Hg, flat_w, fc_w, fc_b = _prepare_params(params, H)

    # Time-major pre-flatten in the wrapper (cheap XLA op): inside the kernel every
    # per-step gate slab xg[t*B:(t+1)*B] is then a contiguous sublane slice.
    x2d = jnp.transpose(x, (1, 0, 2)).reshape(T * B, D).astype(jnp.bfloat16)

    n_seq_bufs = min(2, max(L - 1, 0))                     # ping-pong only if needed
    kernel = functools.partial(_rnn_lstm_fc_kernel,
                               num_layers=L, batch=B, seq_len=T, gate_width=Hg)
    vmem_spec = pl.BlockSpec(memory_space=pltpu.MemorySpace.VMEM)  # whole array in VMEM
    n_inputs = 1 + len(flat_w) + 2

    return pl.pallas_call(
        kernel,
        out_shape=jax.ShapeDtypeStruct((B, 1), jnp.float32),
        in_specs=[vmem_spec] * n_inputs,
        out_specs=vmem_spec,
        scratch_shapes=[pltpu.VMEM((T * B, Hg), jnp.bfloat16)] * n_seq_bufs,
        compiler_params=pltpu.CompilerParams(vmem_limit_bytes=32 * 1024 * 1024),
    )(x2d, *flat_w, fc_w, fc_b)


# -----------------------------------------------------------------------------
# Deterministic parameter init (PyTorch shapes, uniform(-1/sqrt(H), 1/sqrt(H)))
# -----------------------------------------------------------------------------
def init_params(key, input_dim, hidden_dim, layer_dim):
    k_lstm = 1.0 / jnp.sqrt(hidden_dim)
    layers = []
    for l in range(layer_dim):
        d_in = input_dim if l == 0 else hidden_dim
        key, k1, k2, k3, k4 = jax.random.split(key, 5)
        layers.append({
            "w_ih": jax.random.uniform(k1, (4 * hidden_dim, d_in), jnp.float32, -k_lstm, k_lstm),
            "w_hh": jax.random.uniform(k2, (4 * hidden_dim, hidden_dim), jnp.float32, -k_lstm, k_lstm),
            "b_ih": jax.random.uniform(k3, (4 * hidden_dim,), jnp.float32, -k_lstm, k_lstm),
            "b_hh": jax.random.uniform(k4, (4 * hidden_dim,), jnp.float32, -k_lstm, k_lstm),
        })
    k_fc = 1.0 / jnp.sqrt(hidden_dim)
    key, k5, k6 = jax.random.split(key, 3)
    fc_w = jax.random.uniform(k5, (1, hidden_dim), jnp.float32, -k_fc, k_fc)
    fc_b = jax.random.uniform(k6, (1,), jnp.float32, -k_fc, k_fc)
    return {"lstm": layers, "fc_w": fc_w, "fc_b": fc_b}


# -----------------------------------------------------------------------------
# Pure-JAX f32 reference (correctness check only)
# -----------------------------------------------------------------------------
def reference_forward(x_btd, params):
    x = jnp.transpose(x_btd, (1, 0, 2)).astype(jnp.float32)  # (T, B, D)
    for layer in params["lstm"]:
        H = layer["w_hh"].shape[1]
        B = x.shape[1]
        wih_t = layer["w_ih"].T
        whh_t = layer["w_hh"].T
        bias = layer["b_ih"] + layer["b_hh"]

        def step(carry, x_t):
            h, c = carry
            gates = x_t @ wih_t + h @ whh_t + bias
            i = jax.nn.sigmoid(gates[:, 0:H])
            f = jax.nn.sigmoid(gates[:, H:2 * H])
            g = jnp.tanh(gates[:, 2 * H:3 * H])
            o = jax.nn.sigmoid(gates[:, 3 * H:4 * H])
            c = f * c + i * g
            h = o * jnp.tanh(c)
            return (h, c), h

        init = (jnp.zeros((B, H), jnp.float32), jnp.zeros((B, H), jnp.float32))
        _, x = jax.lax.scan(step, init, x)
    h_last = x[-1]
    return h_last @ params["fc_w"].T + params["fc_b"]


# -----------------------------------------------------------------------------
if __name__ == "__main__":
    B, T = 2, 8
    input_dim, hidden_dim, layer_dim = 16, 32, 2

    key = jax.random.PRNGKey(0)
    key, kx, kp = jax.random.split(key, 3)
    x = jax.random.normal(kx, (B, T, input_dim), dtype=jnp.float32)
    params = init_params(kp, input_dim, hidden_dim, layer_dim)

    out = jax.block_until_ready(rnn_model_forward(x, params))
    ref = jax.block_until_ready(reference_forward(x, params))

    assert out.shape == (B, 1), out.shape
    # bf16 MXU operands (f32 accumulation) -> tolerance relaxed vs the f32 reference.
    assert jnp.allclose(out, ref, atol=5e-2, rtol=5e-2), (out, ref)
    print("KERNEL_OK")
</pallas_src>

<mosaic_0001>
module attributes {stable_mosaic.version = 11 : i64} {
  func.func @_rnn_lstm_fc_kernel(%arg0: memref<16x16xbf16, #tpu.memory_space<vmem>>, %arg1: memref<16x128xbf16, #tpu.memory_space<vmem>>, %arg2: memref<32x128xbf16, #tpu.memory_space<vmem>>, %arg3: memref<1x128xf32, #tpu.memory_space<vmem>>, %arg4: memref<32x128xbf16, #tpu.memory_space<vmem>>, %arg5: memref<32x128xbf16, #tpu.memory_space<vmem>>, %arg6: memref<1x128xf32, #tpu.memory_space<vmem>>, %arg7: memref<1x32xf32, #tpu.memory_space<vmem>>, %arg8: memref<1x1xf32, #tpu.memory_space<vmem>>, %arg9: memref<2x1xf32, #tpu.memory_space<vmem>>, %arg10: memref<16x32xbf16, #tpu.memory_space<vmem>>) attributes {dimension_semantics = [], scalar_prefetch = 0 : i64, scratch_operands = 1 : i64, tpu.core_type = #tpu.core_type<tc>} {
    %c0 = arith.constant 0 : index
    %c0_0 = arith.constant 0 : index
    %0 = vector.load %arg0[%c0, %c0_0] : memref<16x16xbf16, #tpu.memory_space<vmem>>, vector<16x16xbf16>
    %c0_1 = arith.constant 0 : index
    %c0_2 = arith.constant 0 : index
    %1 = vector.load %arg1[%c0_1, %c0_2] : memref<16x128xbf16, #tpu.memory_space<vmem>>, vector<16x128xbf16>
    %c0_3 = arith.constant 0 : index
    %c0_4 = arith.constant 0 : index
    %2 = vector.load %arg2[%c0_3, %c0_4] : memref<32x128xbf16, #tpu.memory_space<vmem>>, vector<32x128xbf16>
    %c0_5 = arith.constant 0 : index
    %c0_6 = arith.constant 0 : index
    %3 = vector.load %arg3[%c0_5, %c0_6] : memref<1x128xf32, #tpu.memory_space<vmem>>, vector<1x128xf32>
    %cst = arith.constant dense<0.000000e+00> : vector<16x128xf32>
    %4 = tpu.matmul %0, %1, %cst {dimension_numbers = #tpu.dot_dimension_numbers<[1], [0], [0], [1], [0, 0, 1, 1], [], []>} : vector<16x16xbf16>, vector<16x128xbf16>, vector<16x128xf32> -> vector<16x128xf32>
    %5 = vector.broadcast %3 : vector<1x128xf32> to vector<16x128xf32>
    %6 = arith.addf %4, %5 : vector<16x128xf32>
    %cst_7 = arith.constant 0.000000e+00 : f32
    %7 = vector.broadcast %cst_7 : f32 to vector<2x32xf32>
    %cst_8 = arith.constant 0.000000e+00 : f32
    %8 = vector.broadcast %cst_8 : f32 to vector<2x32xf32>
    %9 = vector.extract_strided_slice %6 {offsets = [0, 0], sizes = [2, 128], strides = [1, 1]} : vector<16x128xf32> to vector<2x128xf32>
    %10 = arith.truncf %7 : vector<2x32xf32> to vector<2x32xbf16>
    %cst_9 = arith.constant dense<0.000000e+00> : vector<2x128xf32>
    %11 = tpu.matmul %10, %2, %cst_9 {dimension_numbers = #tpu.dot_dimension_numbers<[1], [0], [0], [1], [0, 0, 1, 1], [], []>} : vector<2x32xbf16>, vector<32x128xbf16>, vector<2x128xf32> -> vector<2x128xf32>
    %12 = arith.addf %9, %11 : vector<2x128xf32>
    %13 = math.tanh %12 : vector<2x128xf32>
    %14 = vector.extract_strided_slice %13 {offsets = [0, 0], sizes = [2, 32], strides = [1, 1]} : vector<2x128xf32> to vector<2x32xf32>
    %cst_10 = arith.constant 5.000000e-01 : f32
    %15 = vector.broadcast %cst_10 : f32 to vector<2x32xf32>
    %16 = arith.mulf %15, %14 : vector<2x32xf32>
    %cst_11 = arith.constant 5.000000e-01 : f32
    %17 = vector.broadcast %cst_11 : f32 to vector<2x32xf32>
    %18 = arith.addf %16, %17 : vector<2x32xf32>
    %19 = vector.extract_strided_slice %13 {offsets = [0, 32], sizes = [2, 32], strides = [1, 1]} : vector<2x128xf32> to vector<2x32xf32>
    %cst_12 = arith.constant 5.000000e-01 : f32
    %20 = vector.broadcast %cst_12 : f32 to vector<2x32xf32>
    %21 = arith.mulf %20, %19 : vector<2x32xf32>
    %cst_13 = arith.constant 5.000000e-01 : f32
    %22 = vector.broadcast %cst_13 : f32 to vector<2x32xf32>
    %23 = arith.addf %21, %22 : vector<2x32xf32>
    %24 = vector.extract_strided_slice %13 {offsets = [0, 64], sizes = [2, 32], strides = [1, 1]} : vector<2x128xf32> to vector<2x32xf32>
    %25 = vector.extract_strided_slice %13 {offsets = [0, 96], sizes = [2, 32], strides = [1, 1]} : vector<2x128xf32> to vector<2x32xf32>
    %cst_14 = arith.constant 5.000000e-01 : f32
    %26 = vector.broadcast %cst_14 : f32 to vector<2x32xf32>
    %27 = arith.mulf %26, %25 : vector<2x32xf32>
    %cst_15 = arith.constant 5.000000e-01 : f32
    %28 = vector.broadcast %cst_15 : f32 to vector<2x32xf32>
    %29 = arith.addf %27, %28 : vector<2x32xf32>
    %30 = arith.mulf %23, %8 : vector<2x32xf32>
    %31 = arith.mulf %18, %24 : vector<2x32xf32>
    %32 = arith.addf %30, %31 : vector<2x32xf32>
    %33 = math.tanh %32 : vector<2x32xf32>
    %34 = arith.mulf %29, %33 : vector<2x32xf32>
    %35 = arith.truncf %34 : vector<2x32xf32> to vector<2x32xbf16>
    %c0_16 = arith.constant 0 : index
    %c0_17 = arith.constant 0 : index
    %36 = vector.load %arg10[%c0_16, %c0_17] : memref<16x32xbf16, #tpu.memory_space<vmem>>, vector<2x32xbf16>
    tpu.vector_store %arg10[%c0_16, %c0_17], %35 {strides = array<i32>} : memref<16x32xbf16, #tpu.memory_space<vmem>>, vector<2x32xbf16>,
    %37 = vector.extract_strided_slice %6 {offsets = [2, 0], sizes = [2, 128], strides = [1, 1]} : vector<16x128xf32> to vector<2x128xf32>
    %38 = arith.truncf %34 : vector<2x32xf32> to vector<2x32xbf16>
    %cst_18 = arith.constant dense<0.000000e+00> : vector<2x128xf32>
    %39 = tpu.matmul %38, %2, %cst_18 {dimension_numbers = #tpu.dot_dimension_numbers<[1], [0], [0], [1], [0, 0, 1, 1], [], []>} : vector<2x32xbf16>, vector<32x128xbf16>, vector<2x128xf32> -> vector<2x128xf32>
    %40 = arith.addf %37, %39 : vector<2x128xf32>
    %41 = math.tanh %40 : vector<2x128xf32>
    %42 = vector.extract_strided_slice %41 {offsets = [0, 0], sizes = [2, 32], strides = [1, 1]} : vector<2x128xf32> to vector<2x32xf32>
    %cst_19 = arith.constant 5.000000e-01 : f32
    %43 = vector.broadcast %cst_19 : f32 to vector<2x32xf32>
    %44 = arith.mulf %43, %42 : vector<2x32xf32>
    %cst_20 = arith.constant 5.000000e-01 : f32
    %45 = vector.broadcast %cst_20 : f32 to vector<2x32xf32>
    %46 = arith.addf %44, %45 : vector<2x32xf32>
    %47 = vector.extract_strided_slice %41 {offsets = [0, 32], sizes = [2, 32], strides = [1, 1]} : vector<2x128xf32> to vector<2x32xf32>
    %cst_21 = arith.constant 5.000000e-01 : f32
    %48 = vector.broadcast %cst_21 : f32 to vector<2x32xf32>
    %49 = arith.mulf %48, %47 : vector<2x32xf32>
    %cst_22 = arith.constant 5.000000e-01 : f32
    %50 = vector.broadcast %cst_22 : f32 to vector<2x32xf32>
    %51 = arith.addf %49, %50 : vector<2x32xf32>
    %52 = vector.extract_strided_slice %41 {offsets = [0, 64], sizes = [2, 32], strides = [1, 1]} : vector<2x128xf32> to vector<2x32xf32>
    %53 = vector.extract_strided_slice %41 {offsets = [0, 96], sizes = [2, 32], strides = [1, 1]} : vector<2x128xf32> to vector<2x32xf32>
    %cst_23 = arith.constant 5.000000e-01 : f32
    %54 = vector.broadcast %cst_23 : f32 to vector<2x32xf32>
    %55 = arith.mulf %54, %53 : vector<2x32xf32>
    %cst_24 = arith.constant 5.000000e-01 : f32
    %56 = vector.broadcast %cst_24 : f32 to vector<2x32xf32>
    %57 = arith.addf %55, %56 : vector<2x32xf32>
    %58 = arith.mulf %51, %32 : vector<2x32xf32>
    %59 = arith.mulf %46, %52 : vector<2x32xf32>
    %60 = arith.addf %58, %59 : vector<2x32xf32>
    %61 = math.tanh %60 : vector<2x32xf32>
    %62 = arith.mulf %57, %61 : vector<2x32xf32>
    %63 = arith.truncf %62 : vector<2x32xf32> to vector<2x32xbf16>
    %c2 = arith.constant 2 : index
    %c0_25 = arith.constant 0 : index
    %64 = vector.load %arg10[%c2, %c0_25] : memref<16x32xbf16, #tpu.memory_space<vmem>>, vector<2x32xbf16>
    tpu.vector_store %arg10[%c2, %c0_25], %63 {strides = array<i32>} : memref<16x32xbf16, #tpu.memory_space<vmem>>, vector<2x32xbf16>,
    %65 = vector.extract_strided_slice %6 {offsets = [4, 0], sizes = [2, 128], strides = [1, 1]} : vector<16x128xf32> to vector<2x128xf32>
    %66 = arith.truncf %62 : vector<2x32xf32> to vector<2x32xbf16>
    %cst_26 = arith.constant dense<0.000000e+00> : vector<2x128xf32>
    %67 = tpu.matmul %66, %2, %cst_26 {dimension_numbers = #tpu.dot_dimension_numbers<[1], [0], [0], [1], [0, 0, 1, 1], [], []>} : vector<2x32xbf16>, vector<32x128xbf16>, vector<2x128xf32> -> vector<2x128xf32>
    %68 = arith.addf %65, %67 : vector<2x128xf32>
    %69 = math.tanh %68 : vector<2x128xf32>
    %70 = vector.extract_strided_slice %69 {offsets = [0, 0], sizes = [2, 32], strides = [1, 1]} : vector<2x128xf32> to vector<2x32xf32>
    %cst_27 = arith.constant 5.000000e-01 : f32
    %71 = vector.broadcast %cst_27 : f32 to vector<2x32xf32>
    %72 = arith.mulf %71, %70 : vector<2x32xf32>
    %cst_28 = arith.constant 5.000000e-01 : f32
    %73 = vector.broadcast %cst_28 : f32 to vector<2x32xf32>
    %74 = arith.addf %72, %73 : vector<2x32xf32>
    %75 = vector.extract_strided_slice %69 {offsets = [0, 32], sizes = [2, 32], strides = [1, 1]} : vector<2x128xf32> to vector<2x32xf32>
    %cst_29 = arith.constant 5.000000e-01 : f32
    %76 = vector.broadcast %cst_29 : f32 to vector<2x32xf32>
    %77 = arith.mulf %76, %75 : vector<2x32xf32>
    %cst_30 = arith.constant 5.000000e-01 : f32
    %78 = vector.broadcast %cst_30 : f32 to vector<2x32xf32>
    %79 = arith.addf %77, %78 : vector<2x32xf32>
    %80 = vector.extract_strided_slice %69 {offsets = [0, 64], sizes = [2, 32], strides = [1, 1]} : vector<2x128xf32> to vector<2x32xf32>
    %81 = vector.extract_strided_slice %69 {offsets = [0, 96], sizes = [2, 32], strides = [1, 1]} : vector<2x128xf32> to vector<2x32xf32>
    %cst_31 = arith.constant 5.000000e-01 : f32
    %82 = vector.broadcast %cst_31 : f32 to vector<2x32xf32>
    %83 = arith.mulf %82, %81 : vector<2x32xf32>
    %cst_32 = arith.constant 5.000000e-01 : f32
    %84 = vector.broadcast %cst_32 : f32 to vector<2x32xf32>
    %85 = arith.addf %83, %84 : vector<2x32xf32>
    %86 = arith.mulf %79, %60 : vector<2x32xf32>
    %87 = arith.mulf %74, %80 : vector<2x32xf32>
    %88 = arith.addf %86, %87 : vector<2x32xf32>
    %89 = math.tanh %88 : vector<2x32xf32>
    %90 = arith.mulf %85, %89 : vector<2x32xf32>
    %91 = arith.truncf %90 : vector<2x32xf32> to vector<2x32xbf16>
    %c4 = arith.constant 4 : index
    %c0_33 = arith.constant 0 : index
    %92 = vector.load %arg10[%c4, %c0_33] : memref<16x32xbf16, #tpu.memory_space<vmem>>, vector<2x32xbf16>
    tpu.vector_store %arg10[%c4, %c0_33], %91 {strides = array<i32>} : memref<16x32xbf16, #tpu.memory_space<vmem>>, vector<2x32xbf16>,
    %93 = vector.extract_strided_slice %6 {offsets = [6, 0], sizes = [2, 128], strides = [1, 1]} : vector<16x128xf32> to vector<2x128xf32>
    %94 = arith.truncf %90 : vector<2x32xf32> to vector<2x32xbf16>
    %cst_34 = arith.constant dense<0.000000e+00> : vector<2x128xf32>
    %95 = tpu.matmul %94, %2, %cst_34 {dimension_numbers = #tpu.dot_dimension_numbers<[1], [0], [0], [1], [0, 0, 1, 1], [], []>} : vector<2x32xbf16>, vector<32x128xbf16>, vector<2x128xf32> -> vector<2x128xf32>
    %96 = arith.addf %93, %95 : vector<2x128xf32>
    %97 = math.tanh %96 : vector<2x128xf32>
    %98 = vector.extract_strided_slice %97 {offsets = [0, 0], sizes = [2, 32], strides = [1, 1]} : vector<2x128xf32> to vector<2x32xf32>
    %cst_35 = arith.constant 5.000000e-01 : f32
    %99 = vector.broadcast %cst_35 : f32 to vector<2x32xf32>
    %100 = arith.mulf %99, %98 : vector<2x32xf32>
    %cst_36 = arith.constant 5.000000e-01 : f32
    %101 = vector.broadcast %cst_36 : f32 to vector<2x32xf32>
    %102 = arith.addf %100, %101 : vector<2x32xf32>
    %103 = vector.extract_strided_slice %97 {offsets = [0, 32], sizes = [2, 32], strides = [1, 1]} : vector<2x128xf32> to vector<2x32xf32>
    %cst_37 = arith.constant 5.000000e-01 : f32
    %104 = vector.broadcast %cst_37 : f32 to vector<2x32xf32>
    %105 = arith.mulf %104, %103 : vector<2x32xf32>
    %cst_38 = arith.constant 5.000000e-01 : f32
    %106 = vector.broadcast %cst_38 : f32 to vector<2x32xf32>
    %107 = arith.addf %105, %106 : vector<2x32xf32>
    %108 = vector.extract_strided_slice %97 {offsets = [0, 64], sizes = [2, 32], strides = [1, 1]} : vector<2x128xf32> to vector<2x32xf32>
    %109 = vector.extract_strided_slice %97 {offsets = [0, 96], sizes = [2, 32], strides = [1, 1]} : vector<2x128xf32> to vector<2x32xf32>
    %cst_39 = arith.constant 5.000000e-01 : f32
    %110 = vector.broadcast %cst_39 : f32 to vector<2x32xf32>
    %111 = arith.mulf %110, %109 : vector<2x32xf32>
    %cst_40 = arith.constant 5.000000e-01 : f32
    %112 = vector.broadcast %cst_40 : f32 to vector<2x32xf32>
    %113 = arith.addf %111, %112 : vector<2x32xf32>
    %114 = arith.mulf %107, %88 : vector<2x32xf32>
    %115 = arith.mulf %102, %108 : vector<2x32xf32>
    %116 = arith.addf %114, %115 : vector<2x32xf32>
    %117 = math.tanh %116 : vector<2x32xf32>
    %118 = arith.mulf %113, %117 : vector<2x32xf32>
    %119 = arith.truncf %118 : vector<2x32xf32> to vector<2x32xbf16>
    %c6 = arith.constant 6 : index
    %c0_41 = arith.constant 0 : index
    %120 = vector.load %arg10[%c6, %c0_41] : memref<16x32xbf16, #tpu.memory_space<vmem>>, vector<2x32xbf16>
    tpu.vector_store %arg10[%c6, %c0_41], %119 {strides = array<i32>} : memref<16x32xbf16, #tpu.memory_space<vmem>>, vector<2x32xbf16>,
    %121 = vector.extract_strided_slice %6 {offsets = [8, 0], sizes = [2, 128], strides = [1, 1]} : vector<16x128xf32> to vector<2x128xf32>
    %122 = arith.truncf %118 : vector<2x32xf32> to vector<2x32xbf16>
    %cst_42 = arith.constant dense<0.000000e+00> : vector<2x128xf32>
    %123 = tpu.matmul %122, %2, %cst_42 {dimension_numbers = #tpu.dot_dimension_numbers<[1], [0], [0], [1], [0, 0, 1, 1], [], []>} : vector<2x32xbf16>, vector<32x128xbf16>, vector<2x128xf32> -> vector<2x128xf32>
    %124 = arith.addf %121, %123 : vector<2x128xf32>
    %125 = math.tanh %124 : vector<2x128xf32>
    %126 = vector.extract_strided_slice %125 {offsets = [0, 0], sizes = [2, 32], strides = [1, 1]} : vector<2x128xf32> to vector<2x32xf32>
    %cst_43 = arith.constant 5.000000e-01 : f32
    %127 = vector.broadcast %cst_43 : f32 to vector<2x32xf32>
    %128 = arith.mulf %127, %126 : vector<2x32xf32>
    %cst_44 = arith.constant 5.000000e-01 : f32
    %129 = vector.broadcast %cst_44 : f32 to vector<2x32xf32>
    %130 = arith.addf %128, %129 : vector<2x32xf32>
    %131 = vector.extract_strided_slice %125 {offsets = [0, 32], sizes = [2, 32], strides = [1, 1]} : vector<2x128xf32> to vector<2x32xf32>
    %cst_45 = arith.constant 5.000000e-01 : f32
    %132 = vector.broadcast %cst_45 : f32 to vector<2x32xf32>
    %133 = arith.mulf %132, %131 : vector<2x32xf32>
    %cst_46 = arith.constant 5.000000e-01 : f32
    %134 = vector.broadcast %cst_46 : f32 to vector<2x32xf32>
    %135 = arith.addf %133, %134 : vector<2x32xf32>
    %136 = vector.extract_strided_slice %125 {offsets = [0, 64], sizes = [2, 32], strides = [1, 1]} : vector<2x128xf32> to vector<2x32xf32>
    %137 = vector.extract_strided_slice %125 {offsets = [0, 96], sizes = [2, 32], strides = [1, 1]} : vector<2x128xf32> to vector<2x32xf32>
    %cst_47 = arith.constant 5.000000e-01 : f32
    %138 = vector.broadcast %cst_47 : f32 to vector<2x32xf32>
    %139 = arith.mulf %138, %137 : vector<2x32xf32>
    %cst_48 = arith.constant 5.000000e-01 : f32
    %140 = vector.broadcast %cst_48 : f32 to vector<2x32xf32>
    %141 = arith.addf %139, %140 : vector<2x32xf32>
    %142 = arith.mulf %135, %116 : vector<2x32xf32>
    %143 = arith.mulf %130, %136 : vector<2x32xf32>
    %144 = arith.addf %142, %143 : vector<2x32xf32>
    %145 = math.tanh %144 : vector<2x32xf32>
    %146 = arith.mulf %141, %145 : vector<2x32xf32>
    %147 = arith.truncf %146 : vector<2x32xf32> to vector<2x32xbf16>
    %c8 = arith.constant 8 : index
    %c0_49 = arith.constant 0 : index
    %148 = vector.load %arg10[%c8, %c0_49] : memref<16x32xbf16, #tpu.memory_space<vmem>>, vector<2x32xbf16>
    tpu.vector_store %arg10[%c8, %c0_49], %147 {strides = array<i32>} : memref<16x32xbf16, #tpu.memory_space<vmem>>, vector<2x32xbf16>,
    %149 = vector.extract_strided_slice %6 {offsets = [10, 0], sizes = [2, 128], strides = [1, 1]} : vector<16x128xf32> to vector<2x128xf32>
    %150 = arith.truncf %146 : vector<2x32xf32> to vector<2x32xbf16>
    %cst_50 = arith.constant dense<0.000000e+00> : vector<2x128xf32>
    %151 = tpu.matmul %150, %2, %cst_50 {dimension_numbers = #tpu.dot_dimension_numbers<[1], [0], [0], [1], [0, 0, 1, 1], [], []>} : vector<2x32xbf16>, vector<32x128xbf16>, vector<2x128xf32> -> vector<2x128xf32>
    %152 = arith.addf %149, %151 : vector<2x128xf32>
    %153 = math.tanh %152 : vector<2x128xf32>
    %154 = vector.extract_strided_slice %153 {offsets = [0, 0], sizes = [2, 32], strides = [1, 1]} : vector<2x128xf32> to vector<2x32xf32>
    %cst_51 = arith.constant 5.000000e-01 : f32
    %155 = vector.broadcast %cst_51 : f32 to vector<2x32xf32>
    %156 = arith.mulf %155, %154 : vector<2x32xf32>
    %cst_52 = arith.constant 5.000000e-01 : f32
    %157 = vector.broadcast %cst_52 : f32 to vector<2x32xf32>
    %158 = arith.addf %156, %157 : vector<2x32xf32>
    %159 = vector.extract_strided_slice %153 {offsets = [0, 32], sizes = [2, 32], strides = [1, 1]} : vector<2x128xf32> to vector<2x32xf32>
    %cst_53 = arith.constant 5.000000e-01 : f32
    %160 = vector.broadcast %cst_53 : f32 to vector<2x32xf32>
    %161 = arith.mulf %160, %159 : vector<2x32xf32>
    %cst_54 = arith.constant 5.000000e-01 : f32
    %162 = vector.broadcast %cst_54 : f32 to vector<2x32xf32>
    %163 = arith.addf %161, %162 : vector<2x32xf32>
    %164 = vector.extract_strided_slice %153 {offsets = [0, 64], sizes = [2, 32], strides = [1, 1]} : vector<2x128xf32> to vector<2x32xf32>
    %165 = vector.extract_strided_slice %153 {offsets = [0, 96], sizes = [2, 32], strides = [1, 1]} : vector<2x128xf32> to vector<2x32xf32>
    %cst_55 = arith.constant 5.000000e-01 : f32
    %166 = vector.broadcast %cst_55 : f32 to vector<2x32xf32>
    %167 = arith.mulf %166, %165 : vector<2x32xf32>
    %cst_56 = arith.constant 5.000000e-01 : f32
    %168 = vector.broadcast %cst_56 : f32 to vector<2x32xf32>
    %169 = arith.addf %167, %168 : vector<2x32xf32>
    %170 = arith.mulf %163, %144 : vector<2x32xf32>
    %171 = arith.mulf %158, %164 : vector<2x32xf32>
    %172 = arith.addf %170, %171 : vector<2x32xf32>
    %173 = math.tanh %172 : vector<2x32xf32>
    %174 = arith.mulf %169, %173 : vector<2x32xf32>
    %175 = arith.truncf %174 : vector<2x32xf32> to vector<2x32xbf16>
    %c10 = arith.constant 10 : index
    %c0_57 = arith.constant 0 : index
    %176 = vector.load %arg10[%c10, %c0_57] : memref<16x32xbf16, #tpu.memory_space<vmem>>, vector<2x32xbf16>
    tpu.vector_store %arg10[%c10, %c0_57], %175 {strides = array<i32>} : memref<16x32xbf16, #tpu.memory_space<vmem>>, vector<2x32xbf16>,
    %177 = vector.extract_strided_slice %6 {offsets = [12, 0], sizes = [2, 128], strides = [1, 1]} : vector<16x128xf32> to vector<2x128xf32>
    %178 = arith.truncf %174 : vector<2x32xf32> to vector<2x32xbf16>
    %cst_58 = arith.constant dense<0.000000e+00> : vector<2x128xf32>
    %179 = tpu.matmul %178, %2, %cst_58 {dimension_numbers = #tpu.dot_dimension_numbers<[1], [0], [0], [1], [0, 0, 1, 1], [], []>} : vector<2x32xbf16>, vector<32x128xbf16>, vector<2x128xf32> -> vector<2x128xf32>
    %180 = arith.addf %177, %179 : vector<2x128xf32>
    %181 = math.tanh %180 : vector<2x128xf32>
    %182 = vector.extract_strided_slice %181 {offsets = [0, 0], sizes = [2, 32], strides = [1, 1]} : vector<2x128xf32> to vector<2x32xf32>
    %cst_59 = arith.constant 5.000000e-01 : f32
    %183 = vector.broadcast %cst_59 : f32 to vector<2x32xf32>
    %184 = arith.mulf %183, %182 : vector<2x32xf32>
    %cst_60 = arith.constant 5.000000e-01 : f32
    %185 = vector.broadcast %cst_60 : f32 to vector<2x32xf32>
    %186 = arith.addf %184, %185 : vector<2x32xf32>
    %187 = vector.extract_strided_slice %181 {offsets = [0, 32], sizes = [2, 32], strides = [1, 1]} : vector<2x128xf32> to vector<2x32xf32>
    %cst_61 = arith.constant 5.000000e-01 : f32
    %188 = vector.broadcast %cst_61 : f32 to vector<2x32xf32>
    %189 = arith.mulf %188, %187 : vector<2x32xf32>
    %cst_62 = arith.constant 5.000000e-01 : f32
    %190 = vector.broadcast %cst_62 : f32 to vector<2x32xf32>
    %191 = arith.addf %189, %190 : vector<2x32xf32>
    %192 = vector.extract_strided_slice %181 {offsets = [0, 64], sizes = [2, 32], strides = [1, 1]} : vector<2x128xf32> to vector<2x32xf32>
    %193 = vector.extract_strided_slice %181 {offsets = [0, 96], sizes = [2, 32], strides = [1, 1]} : vector<2x128xf32> to vector<2x32xf32>
    %cst_63 = arith.constant 5.000000e-01 : f32
    %194 = vector.broadcast %cst_63 : f32 to vector<2x32xf32>
    %195 = arith.mulf %194, %193 : vector<2x32xf32>
    %cst_64 = arith.constant 5.000000e-01 : f32
    %196 = vector.broadcast %cst_64 : f32 to vector<2x32xf32>
    %197 = arith.addf %195, %196 : vector<2x32xf32>
    %198 = arith.mulf %191, %172 : vector<2x32xf32>
    %199 = arith.mulf %186, %192 : vector<2x32xf32>
    %200 = arith.addf %198, %199 : vector<2x32xf32>
    %201 = math.tanh %200 : vector<2x32xf32>
    %202 = arith.mulf %197, %201 : vector<2x32xf32>
    %203 = arith.truncf %202 : vector<2x32xf32> to vector<2x32xbf16>
    %c12 = arith.constant 12 : index
    %c0_65 = arith.constant 0 : index
    %204 = vector.load %arg10[%c12, %c0_65] : memref<16x32xbf16, #tpu.memory_space<vmem>>, vector<2x32xbf16>
    tpu.vector_store %arg10[%c12, %c0_65], %203 {strides = array<i32>} : memref<16x32xbf16, #tpu.memory_space<vmem>>, vector<2x32xbf16>,
    %205 = vector.extract_strided_slice %6 {offsets = [14, 0], sizes = [2, 128], strides = [1, 1]} : vector<16x128xf32> to vector<2x128xf32>
    %206 = arith.truncf %202 : vector<2x32xf32> to vector<2x32xbf16>
    %cst_66 = arith.constant dense<0.000000e+00> : vector<2x128xf32>
    %207 = tpu.matmul %206, %2, %cst_66 {dimension_numbers = #tpu.dot_dimension_numbers<[1], [0], [0], [1], [0, 0, 1, 1], [], []>} : vector<2x32xbf16>, vector<32x128xbf16>, vector<2x128xf32> -> vector<2x128xf32>
    %208 = arith.addf %205, %207 : vector<2x128xf32>
    %209 = math.tanh %208 : vector<2x128xf32>
    %210 = vector.extract_strided_slice %209 {offsets = [0, 0], sizes = [2, 32], strides = [1, 1]} : vector<2x128xf32> to vector<2x32xf32>
    %cst_67 = arith.constant 5.000000e-01 : f32
    %211 = vector.broadcast %cst_67 : f32 to vector<2x32xf32>
    %212 = arith.mulf %211, %210 : vector<2x32xf32>
    %cst_68 = arith.constant 5.000000e-01 : f32
    %213 = vector.broadcast %cst_68 : f32 to vector<2x32xf32>
    %214 = arith.addf %212, %213 : vector<2x32xf32>
    %215 = vector.extract_strided_slice %209 {offsets = [0, 32], sizes = [2, 32], strides = [1, 1]} : vector<2x128xf32> to vector<2x32xf32>
    %cst_69 = arith.constant 5.000000e-01 : f32
    %216 = vector.broadcast %cst_69 : f32 to vector<2x32xf32>
    %217 = arith.mulf %216, %215 : vector<2x32xf32>
    %cst_70 = arith.constant 5.000000e-01 : f32
    %218 = vector.broadcast %cst_70 : f32 to vector<2x32xf32>
    %219 = arith.addf %217, %218 : vector<2x32xf32>
    %220 = vector.extract_strided_slice %209 {offsets = [0, 64], sizes = [2, 32], strides = [1, 1]} : vector<2x128xf32> to vector<2x32xf32>
    %221 = vector.extract_strided_slice %209 {offsets = [0, 96], sizes = [2, 32], strides = [1, 1]} : vector<2x128xf32> to vector<2x32xf32>
    %cst_71 = arith.constant 5.000000e-01 : f32
    %222 = vector.broadcast %cst_71 : f32 to vector<2x32xf32>
    %223 = arith.mulf %222, %221 : vector<2x32xf32>
    %cst_72 = arith.constant 5.000000e-01 : f32
    %224 = vector.broadcast %cst_72 : f32 to vector<2x32xf32>
    %225 = arith.addf %223, %224 : vector<2x32xf32>
    %226 = arith.mulf %219, %200 : vector<2x32xf32>
    %227 = arith.mulf %214, %220 : vector<2x32xf32>
    %228 = arith.addf %226, %227 : vector<2x32xf32>
    %229 = math.tanh %228 : vector<2x32xf32>
    %230 = arith.mulf %225, %229 : vector<2x32xf32>
    %231 = arith.truncf %230 : vector<2x32xf32> to vector<2x32xbf16>
    %c14 = arith.constant 14 : index
    %c0_73 = arith.constant 0 : index
    %232 = vector.load %arg10[%c14, %c0_73] : memref<16x32xbf16, #tpu.memory_space<vmem>>, vector<2x32xbf16>
    tpu.vector_store %arg10[%c14, %c0_73], %231 {strides = array<i32>} : memref<16x32xbf16, #tpu.memory_space<vmem>>, vector<2x32xbf16>,
    %c0_74 = arith.constant 0 : index
    %c0_75 = arith.constant 0 : index
    %233 = vector.load %arg10[%c0_74, %c0_75] : memref<16x32xbf16, #tpu.memory_space<vmem>>, vector<16x32xbf16>
    %c0_76 = arith.constant 0 : index
    %c0_77 = arith.constant 0 : index
    %234 = vector.load %arg4[%c0_76, %c0_77] : memref<32x128xbf16, #tpu.memory_space<vmem>>, vector<32x128xbf16>
    %c0_78 = arith.constant 0 : index
    %c0_79 = arith.constant 0 : index
    %235 = vector.load %arg5[%c0_78, %c0_79] : memref<32x128xbf16, #tpu.memory_space<vmem>>, vector<32x128xbf16>
    %c0_80 = arith.constant 0 : index
    %c0_81 = arith.constant 0 : index
    %236 = vector.load %arg6[%c0_80, %c0_81] : memref<1x128xf32, #tpu.memory_space<vmem>>, vector<1x128xf32>
    %cst_82 = arith.constant dense<0.000000e+00> : vector<16x128xf32>
    %237 = tpu.matmul %233, %234, %cst_82 {dimension_numbers = #tpu.dot_dimension_numbers<[1], [0], [0], [1], [0, 0, 1, 1], [], []>} : vector<16x32xbf16>, vector<32x128xbf16>, vector<16x128xf32> -> vector<16x128xf32>
    %238 = vector.broadcast %236 : vector<1x128xf32> to vector<16x128xf32>
    %239 = arith.addf %237, %238 : vector<16x128xf32>
    %cst_83 = arith.constant 0.000000e+00 : f32
    %240 = vector.broadcast %cst_83 : f32 to vector<2x32xf32>
    %cst_84 = arith.constant 0.000000e+00 : f32
    %241 = vector.broadcast %cst_84 : f32 to vector<2x32xf32>
    %242 = vector.extract_strided_slice %239 {offsets = [0, 0], sizes = [2, 128], strides = [1, 1]} : vector<16x128xf32> to vector<2x128xf32>
    %243 = arith.truncf %240 : vector<2x32xf32> to vector<2x32xbf16>
    %cst_85 = arith.constant dense<0.000000e+00> : vector<2x128xf32>
    %244 = tpu.matmul %243, %235, %cst_85 {dimension_numbers = #tpu.dot_dimension_numbers<[1], [0], [0], [1], [0, 0, 1, 1], [], []>} : vector<2x32xbf16>, vector<32x128xbf16>, vector<2x128xf32> -> vector<2x128xf32>
    %245 = arith.addf %242, %244 : vector<2x128xf32>
    %246 = math.tanh %245 : vector<2x128xf32>
    %247 = vector.extract_strided_slice %246 {offsets = [0, 0], sizes = [2, 32], strides = [1, 1]} : vector<2x128xf32> to vector<2x32xf32>
    %cst_86 = arith.constant 5.000000e-01 : f32
    %248 = vector.broadcast %cst_86 : f32 to vector<2x32xf32>
    %249 = arith.mulf %248, %247 : vector<2x32xf32>
    %cst_87 = arith.constant 5.000000e-01 : f32
    %250 = vector.broadcast %cst_87 : f32 to vector<2x32xf32>
    %251 = arith.addf %249, %250 : vector<2x32xf32>
    %252 = vector.extract_strided_slice %246 {offsets = [0, 32], sizes = [2, 32], strides = [1, 1]} : vector<2x128xf32> to vector<2x32xf32>
    %cst_88 = arith.constant 5.000000e-01 : f32
    %253 = vector.broadcast %cst_88 : f32 to vector<2x32xf32>
    %254 = arith.mulf %253, %252 : vector<2x32xf32>
    %cst_89 = arith.constant 5.000000e-01 : f32
    %255 = vector.broadcast %cst_89 : f32 to vector<2x32xf32>
    %256 = arith.addf %254, %255 : vector<2x32xf32>
    %257 = vector.extract_strided_slice %246 {offsets = [0, 64], sizes = [2, 32], strides = [1, 1]} : vector<2x128xf32> to vector<2x32xf32>
    %258 = vector.extract_strided_slice %246 {offsets = [0, 96], sizes = [2, 32], strides = [1, 1]} : vector<2x128xf32> to vector<2x32xf32>
    %cst_90 = arith.constant 5.000000e-01 : f32
    %259 = vector.broadcast %cst_90 : f32 to vector<2x32xf32>
    %260 = arith.mulf %259, %258 : vector<2x32xf32>
    %cst_91 = arith.constant 5.000000e-01 : f32
    %261 = vector.broadcast %cst_91 : f32 to vector<2x32xf32>
    %262 = arith.addf %260, %261 : vector<2x32xf32>
    %263 = arith.mulf %256, %241 : vector<2x32xf32>
    %264 = arith.mulf %251, %257 : vector<2x32xf32>
    %265 = arith.addf %263, %264 : vector<2x32xf32>
    %266 = math.tanh %265 : vector<2x32xf32>
    %267 = arith.mulf %262, %266 : vector<2x32xf32>
    %268 = vector.extract_strided_slice %239 {offsets = [2, 0], sizes = [2, 128], strides = [1, 1]} : vector<16x128xf32> to vector<2x128xf32>
    %269 = arith.truncf %267 : vector<2x32xf32> to vector<2x32xbf16>
    %cst_92 = arith.constant dense<0.000000e+00> : vector<2x128xf32>
    %270 = tpu.matmul %269, %235, %cst_92 {dimension_numbers = #tpu.dot_dimension_numbers<[1], [0], [0], [1], [0, 0, 1, 1], [], []>} : vector<2x32xbf16>, vector<32x128xbf16>, vector<2x128xf32> -> vector<2x128xf32>
    %271 = arith.addf %268, %270 : vector<2x128xf32>
    %272 = math.tanh %271 : vector<2x128xf32>
    %273 = vector.extract_strided_slice %272 {offsets = [0, 0], sizes = [2, 32], strides = [1, 1]} : vector<2x128xf32> to vector<2x32xf32>
    %cst_93 = arith.constant 5.000000e-01 : f32
    %274 = vector.broadcast %cst_93 : f32 to vector<2x32xf32>
    %275 = arith.mulf %274, %273 : vector<2x32xf32>
    %cst_94 = arith.constant 5.000000e-01 : f32
    %276 = vector.broadcast %cst_94 : f32 to vector<2x32xf32>
    %277 = arith.addf %275, %276 : vector<2x32xf32>
    %278 = vector.extract_strided_slice %272 {offsets = [0, 32], sizes = [2, 32], strides = [1, 1]} : vector<2x128xf32> to vector<2x32xf32>
    %cst_95 = arith.constant 5.000000e-01 : f32
    %279 = vector.broadcast %cst_95 : f32 to vector<2x32xf32>
    %280 = arith.mulf %279, %278 : vector<2x32xf32>
    %cst_96 = arith.constant 5.000000e-01 : f32
    %281 = vector.broadcast %cst_96 : f32 to vector<2x32xf32>
    %282 = arith.addf %280, %281 : vector<2x32xf32>
    %283 = vector.extract_strided_slice %272 {offsets = [0, 64], sizes = [2, 32], strides = [1, 1]} : vector<2x128xf32> to vector<2x32xf32>
    %284 = vector.extract_strided_slice %272 {offsets = [0, 96], sizes = [2, 32], strides = [1, 1]} : vector<2x128xf32> to vector<2x32xf32>
    %cst_97 = arith.constant 5.000000e-01 : f32
    %285 = vector.broadcast %cst_97 : f32 to vector<2x32xf32>
    %286 = arith.mulf %285, %284 : vector<2x32xf32>
    %cst_98 = arith.constant 5.000000e-01 : f32
    %287 = vector.broadcast %cst_98 : f32 to vector<2x32xf32>
    %288 = arith.addf %286, %287 : vector<2x32xf32>
    %289 = arith.mulf %282, %265 : vector<2x32xf32>
    %290 = arith.mulf %277, %283 : vector<2x32xf32>
    %291 = arith.addf %289, %290 : vector<2x32xf32>
    %292 = math.tanh %291 : vector<2x32xf32>
    %293 = arith.mulf %288, %292 : vector<2x32xf32>
    %294 = vector.extract_strided_slice %239 {offsets = [4, 0], sizes = [2, 128], strides = [1, 1]} : vector<16x128xf32> to vector<2x128xf32>
    %295 = arith.truncf %293 : vector<2x32xf32> to vector<2x32xbf16>
    %cst_99 = arith.constant dense<0.000000e+00> : vector<2x128xf32>
    %296 = tpu.matmul %295, %235, %cst_99 {dimension_numbers = #tpu.dot_dimension_numbers<[1], [0], [0], [1], [0, 0, 1, 1], [], []>} : vector<2x32xbf16>, vector<32x128xbf16>, vector<2x128xf32> -> vector<2x128xf32>
    %297 = arith.addf %294, %296 : vector<2x128xf32>
    %298 = math.tanh %297 : vector<2x128xf32>
    %299 = vector.extract_strided_slice %298 {offsets = [0, 0], sizes = [2, 32], strides = [1, 1]} : vector<2x128xf32> to vector<2x32xf32>
    %cst_100 = arith.constant 5.000000e-01 : f32
    %300 = vector.broadcast %cst_100 : f32 to vector<2x32xf32>
    %301 = arith.mulf %300, %299 : vector<2x32xf32>
    %cst_101 = arith.constant 5.000000e-01 : f32
    %302 = vector.broadcast %cst_101 : f32 to vector<2x32xf32>
    %303 = arith.addf %301, %302 : vector<2x32xf32>
    %304 = vector.extract_strided_slice %298 {offsets = [0, 32], sizes = [2, 32], strides = [1, 1]} : vector<2x128xf32> to vector<2x32xf32>
    %cst_102 = arith.constant 5.000000e-01 : f32
    %305 = vector.broadcast %cst_102 : f32 to vector<2x32xf32>
    %306 = arith.mulf %305, %304 : vector<2x32xf32>
    %cst_103 = arith.constant 5.000000e-01 : f32
    %307 = vector.broadcast %cst_103 : f32 to vector<2x32xf32>
    %308 = arith.addf %306, %307 : vector<2x32xf32>
    %309 = vector.extract_strided_slice %298 {offsets = [0, 64], sizes = [2, 32], strides = [1, 1]} : vector<2x128xf32> to vector<2x32xf32>
    %310 = vector.extract_strided_slice %298 {offsets = [0, 96], sizes = [2, 32], strides = [1, 1]} : vector<2x128xf32> to vector<2x32xf32>
    %cst_104 = arith.constant 5.000000e-01 : f32
    %311 = vector.broadcast %cst_104 : f32 to vector<2x32xf32>
    %312 = arith.mulf %311, %310 : vector<2x32xf32>
    %cst_105 = arith.constant 5.000000e-01 : f32
    %313 = vector.broadcast %cst_105 : f32 to vector<2x32xf32>
    %314 = arith.addf %312, %313 : vector<2x32xf32>
    %315 = arith.mulf %308, %291 : vector<2x32xf32>
    %316 = arith.mulf %303, %309 : vector<2x32xf32>
    %317 = arith.addf %315, %316 : vector<2x32xf32>
    %318 = math.tanh %317 : vector<2x32xf32>
    %319 = arith.mulf %314, %318 : vector<2x32xf32>
    %320 = vector.extract_strided_slice %239 {offsets = [6, 0], sizes = [2, 128], strides = [1, 1]} : vector<16x128xf32> to vector<2x128xf32>
    %321 = arith.truncf %319 : vector<2x32xf32> to vector<2x32xbf16>
    %cst_106 = arith.constant dense<0.000000e+00> : vector<2x128xf32>
    %322 = tpu.matmul %321, %235, %cst_106 {dimension_numbers = #tpu.dot_dimension_numbers<[1], [0], [0], [1], [0, 0, 1, 1], [], []>} : vector<2x32xbf16>, vector<32x128xbf16>, vector<2x128xf32> -> vector<2x128xf32>
    %323 = arith.addf %320, %322 : vector<2x128xf32>
    %324 = math.tanh %323 : vector<2x128xf32>
    %325 = vector.extract_strided_slice %324 {offsets = [0, 0], sizes = [2, 32], strides = [1, 1]} : vector<2x128xf32> to vector<2x32xf32>
    %cst_107 = arith.constant 5.000000e-01 : f32
    %326 = vector.broadcast %cst_107 : f32 to vector<2x32xf32>
    %327 = arith.mulf %326, %325 : vector<2x32xf32>
    %cst_108 = arith.constant 5.000000e-01 : f32
    %328 = vector.broadcast %cst_108 : f32 to vector<2x32xf32>
    %329 = arith.addf %327, %328 : vector<2x32xf32>
    %330 = vector.extract_strided_slice %324 {offsets = [0, 32], sizes = [2, 32], strides = [1, 1]} : vector<2x128xf32> to vector<2x32xf32>
    %cst_109 = arith.constant 5.000000e-01 : f32
    %331 = vector.broadcast %cst_109 : f32 to vector<2x32xf32>
    %332 = arith.mulf %331, %330 : vector<2x32xf32>
    %cst_110 = arith.constant 5.000000e-01 : f32
    %333 = vector.broadcast %cst_110 : f32 to vector<2x32xf32>
    %334 = arith.addf %332, %333 : vector<2x32xf32>
    %335 = vector.extract_strided_slice %324 {offsets = [0, 64], sizes = [2, 32], strides = [1, 1]} : vector<2x128xf32> to vector<2x32xf32>
    %336 = vector.extract_strided_slice %324 {offsets = [0, 96], sizes = [2, 32], strides = [1, 1]} : vector<2x128xf32> to vector<2x32xf32>
    %cst_111 = arith.constant 5.000000e-01 : f32
    %337 = vector.broadcast %cst_111 : f32 to vector<2x32xf32>
    %338 = arith.mulf %337, %336 : vector<2x32xf32>
    %cst_112 = arith.constant 5.000000e-01 : f32
    %339 = vector.broadcast %cst_112 : f32 to vector<2x32xf32>
    %340 = arith.addf %338, %339 : vector<2x32xf32>
    %341 = arith.mulf %334, %317 : vector<2x32xf32>
    %342 = arith.mulf %329, %335 : vector<2x32xf32>
    %343 = arith.addf %341, %342 : vector<2x32xf32>
    %344 = math.tanh %343 : vector<2x32xf32>
    %345 = arith.mulf %340, %344 : vector<2x32xf32>
    %346 = vector.extract_strided_slice %239 {offsets = [8, 0], sizes = [2, 128], strides = [1, 1]} : vector<16x128xf32> to vector<2x128xf32>
    %347 = arith.truncf %345 : vector<2x32xf32> to vector<2x32xbf16>
    %cst_113 = arith.constant dense<0.000000e+00> : vector<2x128xf32>
    %348 = tpu.matmul %347, %235, %cst_113 {dimension_numbers = #tpu.dot_dimension_numbers<[1], [0], [0], [1], [0, 0, 1, 1], [], []>} : vector<2x32xbf16>, vector<32x128xbf16>, vector<2x128xf32> -> vector<2x128xf32>
    %349 = arith.addf %346, %348 : vector<2x128xf32>
    %350 = math.tanh %349 : vector<2x128xf32>
    %351 = vector.extract_strided_slice %350 {offsets = [0, 0], sizes = [2, 32], strides = [1, 1]} : vector<2x128xf32> to vector<2x32xf32>
    %cst_114 = arith.constant 5.000000e-01 : f32
    %352 = vector.broadcast %cst_114 : f32 to vector<2x32xf32>
    %353 = arith.mulf %352, %351 : vector<2x32xf32>
    %cst_115 = arith.constant 5.000000e-01 : f32
    %354 = vector.broadcast %cst_115 : f32 to vector<2x32xf32>
    %355 = arith.addf %353, %354 : vector<2x32xf32>
    %356 = vector.extract_strided_slice %350 {offsets = [0, 32], sizes = [2, 32], strides = [1, 1]} : vector<2x128xf32> to vector<2x32xf32>
    %cst_116 = arith.constant 5.000000e-01 : f32
    %357 = vector.broadcast %cst_116 : f32 to vector<2x32xf32>
    %358 = arith.mulf %357, %356 : vector<2x32xf32>
    %cst_117 = arith.constant 5.000000e-01 : f32
    %359 = vector.broadcast %cst_117 : f32 to vector<2x32xf32>
    %360 = arith.addf %358, %359 : vector<2x32xf32>
    %361 = vector.extract_strided_slice %350 {offsets = [0, 64], sizes = [2, 32], strides = [1, 1]} : vector<2x128xf32> to vector<2x32xf32>
    %362 = vector.extract_strided_slice %350 {offsets = [0, 96], sizes = [2, 32], strides = [1, 1]} : vector<2x128xf32> to vector<2x32xf32>
    %cst_118 = arith.constant 5.000000e-01 : f32
    %363 = vector.broadcast %cst_118 : f32 to vector<2x32xf32>
    %364 = arith.mulf %363, %362 : vector<2x32xf32>
    %cst_119 = arith.constant 5.000000e-01 : f32
    %365 = vector.broadcast %cst_119 : f32 to vector<2x32xf32>
    %366 = arith.addf %364, %365 : vector<2x32xf32>
    %367 = arith.mulf %360, %343 : vector<2x32xf32>
    %368 = arith.mulf %355, %361 : vector<2x32xf32>
    %369 = arith.addf %367, %368 : vector<2x32xf32>
    %370 = math.tanh %369 : vector<2x32xf32>
    %371 = arith.mulf %366, %370 : vector<2x32xf32>
    %372 = vector.extract_strided_slice %239 {offsets = [10, 0], sizes = [2, 128], strides = [1, 1]} : vector<16x128xf32> to vector<2x128xf32>
    %373 = arith.truncf %371 : vector<2x32xf32> to vector<2x32xbf16>
    %cst_120 = arith.constant dense<0.000000e+00> : vector<2x128xf32>
    %374 = tpu.matmul %373, %235, %cst_120 {dimension_numbers = #tpu.dot_dimension_numbers<[1], [0], [0], [1], [0, 0, 1, 1], [], []>} : vector<2x32xbf16>, vector<32x128xbf16>, vector<2x128xf32> -> vector<2x128xf32>
    %375 = arith.addf %372, %374 : vector<2x128xf32>
    %376 = math.tanh %375 : vector<2x128xf32>
    %377 = vector.extract_strided_slice %376 {offsets = [0, 0], sizes = [2, 32], strides = [1, 1]} : vector<2x128xf32> to vector<2x32xf32>
    %cst_121 = arith.constant 5.000000e-01 : f32
    %378 = vector.broadcast %cst_121 : f32 to vector<2x32xf32>
    %379 = arith.mulf %378, %377 : vector<2x32xf32>
    %cst_122 = arith.constant 5.000000e-01 : f32
    %380 = vector.broadcast %cst_122 : f32 to vector<2x32xf32>
    %381 = arith.addf %379, %380 : vector<2x32xf32>
    %382 = vector.extract_strided_slice %376 {offsets = [0, 32], sizes = [2, 32], strides = [1, 1]} : vector<2x128xf32> to vector<2x32xf32>
    %cst_123 = arith.constant 5.000000e-01 : f32
    %383 = vector.broadcast %cst_123 : f32 to vector<2x32xf32>
    %384 = arith.mulf %383, %382 : vector<2x32xf32>
    %cst_124 = arith.constant 5.000000e-01 : f32
    %385 = vector.broadcast %cst_124 : f32 to vector<2x32xf32>
    %386 = arith.addf %384, %385 : vector<2x32xf32>
    %387 = vector.extract_strided_slice %376 {offsets = [0, 64], sizes = [2, 32], strides = [1, 1]} : vector<2x128xf32> to vector<2x32xf32>
    %388 = vector.extract_strided_slice %376 {offsets = [0, 96], sizes = [2, 32], strides = [1, 1]} : vector<2x128xf32> to vector<2x32xf32>
    %cst_125 = arith.constant 5.000000e-01 : f32
    %389 = vector.broadcast %cst_125 : f32 to vector<2x32xf32>
    %390 = arith.mulf %389, %388 : vector<2x32xf32>
    %cst_126 = arith.constant 5.000000e-01 : f32
    %391 = vector.broadcast %cst_126 : f32 to vector<2x32xf32>
    %392 = arith.addf %390, %391 : vector<2x32xf32>
    %393 = arith.mulf %386, %369 : vector<2x32xf32>
    %394 = arith.mulf %381, %387 : vector<2x32xf32>
    %395 = arith.addf %393, %394 : vector<2x32xf32>
    %396 = math.tanh %395 : vector<2x32xf32>
    %397 = arith.mulf %392, %396 : vector<2x32xf32>
    %398 = vector.extract_strided_slice %239 {offsets = [12, 0], sizes = [2, 128], strides = [1, 1]} : vector<16x128xf32> to vector<2x128xf32>
    %399 = arith.truncf %397 : vector<2x32xf32> to vector<2x32xbf16>
    %cst_127 = arith.constant dense<0.000000e+00> : vector<2x128xf32>
    %400 = tpu.matmul %399, %235, %cst_127 {dimension_numbers = #tpu.dot_dimension_numbers<[1], [0], [0], [1], [0, 0, 1, 1], [], []>} : vector<2x32xbf16>, vector<32x128xbf16>, vector<2x128xf32> -> vector<2x128xf32>
    %401 = arith.addf %398, %400 : vector<2x128xf32>
    %402 = math.tanh %401 : vector<2x128xf32>
    %403 = vector.extract_strided_slice %402 {offsets = [0, 0], sizes = [2, 32], strides = [1, 1]} : vector<2x128xf32> to vector<2x32xf32>
    %cst_128 = arith.constant 5.000000e-01 : f32
    %404 = vector.broadcast %cst_128 : f32 to vector<2x32xf32>
    %405 = arith.mulf %404, %403 : vector<2x32xf32>
    %cst_129 = arith.constant 5.000000e-01 : f32
    %406 = vector.broadcast %cst_129 : f32 to vector<2x32xf32>
    %407 = arith.addf %405, %406 : vector<2x32xf32>
    %408 = vector.extract_strided_slice %402 {offsets = [0, 32], sizes = [2, 32], strides = [1, 1]} : vector<2x128xf32> to vector<2x32xf32>
    %cst_130 = arith.constant 5.000000e-01 : f32
    %409 = vector.broadcast %cst_130 : f32 to vector<2x32xf32>
    %410 = arith.mulf %409, %408 : vector<2x32xf32>
    %cst_131 = arith.constant 5.000000e-01 : f32
    %411 = vector.broadcast %cst_131 : f32 to vector<2x32xf32>
    %412 = arith.addf %410, %411 : vector<2x32xf32>
    %413 = vector.extract_strided_slice %402 {offsets = [0, 64], sizes = [2, 32], strides = [1, 1]} : vector<2x128xf32> to vector<2x32xf32>
    %414 = vector.extract_strided_slice %402 {offsets = [0, 96], sizes = [2, 32], strides = [1, 1]} : vector<2x128xf32> to vector<2x32xf32>
    %cst_132 = arith.constant 5.000000e-01 : f32
    %415 = vector.broadcast %cst_132 : f32 to vector<2x32xf32>
    %416 = arith.mulf %415, %414 : vector<2x32xf32>
    %cst_133 = arith.constant 5.000000e-01 : f32
    %417 = vector.broadcast %cst_133 : f32 to vector<2x32xf32>
    %418 = arith.addf %416, %417 : vector<2x32xf32>
    %419 = arith.mulf %412, %395 : vector<2x32xf32>
    %420 = arith.mulf %407, %413 : vector<2x32xf32>
    %421 = arith.addf %419, %420 : vector<2x32xf32>
    %422 = math.tanh %421 : vector<2x32xf32>
    %423 = arith.mulf %418, %422 : vector<2x32xf32>
    %424 = vector.extract_strided_slice %239 {offsets = [14, 0], sizes = [2, 128], strides = [1, 1]} : vector<16x128xf32> to vector<2x128xf32>
    %425 = arith.truncf %423 : vector<2x32xf32> to vector<2x32xbf16>
    %cst_134 = arith.constant dense<0.000000e+00> : vector<2x128xf32>
    %426 = tpu.matmul %425, %235, %cst_134 {dimension_numbers = #tpu.dot_dimension_numbers<[1], [0], [0], [1], [0, 0, 1, 1], [], []>} : vector<2x32xbf16>, vector<32x128xbf16>, vector<2x128xf32> -> vector<2x128xf32>
    %427 = arith.addf %424, %426 : vector<2x128xf32>
    %428 = math.tanh %427 : vector<2x128xf32>
    %429 = vector.extract_strided_slice %428 {offsets = [0, 0], sizes = [2, 32], strides = [1, 1]} : vector<2x128xf32> to vector<2x32xf32>
    %cst_135 = arith.constant 5.000000e-01 : f32
    %430 = vector.broadcast %cst_135 : f32 to vector<2x32xf32>
    %431 = arith.mulf %430, %429 : vector<2x32xf32>
    %cst_136 = arith.constant 5.000000e-01 : f32
    %432 = vector.broadcast %cst_136 : f32 to vector<2x32xf32>
    %433 = arith.addf %431, %432 : vector<2x32xf32>
    %434 = vector.extract_strided_slice %428 {offsets = [0, 32], sizes = [2, 32], strides = [1, 1]} : vector<2x128xf32> to vector<2x32xf32>
    %cst_137 = arith.constant 5.000000e-01 : f32
    %435 = vector.broadcast %cst_137 : f32 to vector<2x32xf32>
    %436 = arith.mulf %435, %434 : vector<2x32xf32>
    %cst_138 = arith.constant 5.000000e-01 : f32
    %437 = vector.broadcast %cst_138 : f32 to vector<2x32xf32>
    %438 = arith.addf %436, %437 : vector<2x32xf32>
    %439 = vector.extract_strided_slice %428 {offsets = [0, 64], sizes = [2, 32], strides = [1, 1]} : vector<2x128xf32> to vector<2x32xf32>
    %440 = vector.extract_strided_slice %428 {offsets = [0, 96], sizes = [2, 32], strides = [1, 1]} : vector<2x128xf32> to vector<2x32xf32>
    %cst_139 = arith.constant 5.000000e-01 : f32
    %441 = vector.broadcast %cst_139 : f32 to vector<2x32xf32>
    %442 = arith.mulf %441, %440 : vector<2x32xf32>
    %cst_140 = arith.constant 5.000000e-01 : f32
    %443 = vector.broadcast %cst_140 : f32 to vector<2x32xf32>
    %444 = arith.addf %442, %443 : vector<2x32xf32>
    %445 = arith.mulf %438, %421 : vector<2x32xf32>
    %446 = arith.mulf %433, %439 : vector<2x32xf32>
    %447 = arith.addf %445, %446 : vector<2x32xf32>
    %448 = math.tanh %447 : vector<2x32xf32>
    %449 = arith.mulf %444, %448 : vector<2x32xf32>
    %c0_141 = arith.constant 0 : index
    %c0_142 = arith.constant 0 : index
    %450 = vector.load %arg7[%c0_141, %c0_142] : memref<1x32xf32, #tpu.memory_space<vmem>>, vector<1x32xf32>
    %451 = vector.broadcast %450 : vector<1x32xf32> to vector<2x32xf32>
    %452 = arith.mulf %449, %451 : vector<2x32xf32>
    %cst_143 = arith.constant dense<0.000000e+00> : vector<2xf32>
    %453 = vector.multi_reduction <add>, %452, %cst_143 [1] : vector<2x32xf32> to vector<2xf32>
    %454 = vector.shape_cast %453 : vector<2xf32> to vector<2x1xf32>
    %c0_144 = arith.constant 0 : index
    %c0_145 = arith.constant 0 : index
    %455 = vector.load %arg8[%c0_144, %c0_145] : memref<1x1xf32, #tpu.memory_space<vmem>>, vector<1x1xf32>
    %456 = vector.broadcast %455 : vector<1x1xf32> to vector<2x1xf32>
    %457 = arith.addf %454, %456 : vector<2x1xf32>
    %c0_146 = arith.constant 0 : index
    %c0_147 = arith.constant 0 : index
    %458 = vector.load %arg9[%c0_146, %c0_147] : memref<2x1xf32, #tpu.memory_space<vmem>>, vector<2x1xf32>
    tpu.vector_store %arg9[%c0_146, %c0_147], %457 {strides = array<i32>} : memref<2x1xf32, #tpu.memory_space<vmem>>, vector<2x1xf32>,
    return
  }
}

</mosaic_0001>

<bundles_post_ra>
// kernel: tpu_custom_call.1
= control target key start
LH: loop header
LB: loop body
LE: loop exit
PB: predicated region body
PF: predicated region fallthrough
CT: control target
= control target key end

     0   :  { %s2316_s0 = inlined_call_operand.hbm [shape: bf16[16,16], index: 0, kind: input, shape index: {}]   ;;  %s2317_s1 = inlined_call_operand.hbm [shape: bf16[16,128], index: 1, kind: input, shape index: {}]   ;;  %s2318_s2 = inlined_call_operand.hbm [shape: bf16[32,128], index: 2, kind: input, shape index: {}]   ;;  %s2319_s3 = inlined_call_operand.vmem [shape: f32[1,128], index: 3, kind: input, shape index: {}]   ;;  %s2320_s4 = inlined_call_operand.hbm [shape: bf16[32,128], index: 4, kind: input, shape index: {}]   ;;  %s2321_s5 = inlined_call_operand.hbm [shape: bf16[32,128], index: 5, kind: input, shape index: {}]   ;;  %s2322_s6 = inlined_call_operand.vmem [shape: f32[1,128], index: 6, kind: input, shape index: {}]   ;;  %s2323_s7 = inlined_call_operand.vmem [shape: f32[1,32], index: 7, kind: input, shape index: {}]   ;;  %s2324_s8 = inlined_call_operand.<no memory space> [shape: f32[1,1], index: 8, kind: input, shape index: {}]   ;;  %s2325_s9 = inlined_call_operand.vmem [shape: f32[2,1], index: 9, kind: output, shape index: {}]  }
   0x1   :  { %v14_v0 = vstv %s2324_s8 }
   0x2   :  { %15 = vst [vmem:[#allocation3] sm:$0x1] %v14_v0 }
   0x3   :  { %16 = vsyncpa [#allocation5], 0 }
   0x4   :  { %17 = vsyncpa [#allocation7], 0 }
   0x5   :  { %18 = vsyncpa [#allocation10], 0  ;;  %s1962_s11 = smov [#allocation6]   ;;  %s1963_s13 = smov [#allocation9]  }
   0x6   :  { %s36_s12 = sshll.u32 %s1962_s11, 4  ;;  %s62_s14 = sshll.u32 %s1963_s13, 4  ;;  %s37_s12 = int_to_ptr.vmem [resolvable:$true] %s36_s12  ;;  %s63_s14 = int_to_ptr.vmem [resolvable:$true] %s62_s14 }
   0x7   :  { %s1864_s15 = scalar_lea.vmem %s37_s12, 128  ;;  %p1869_p1 = scmp.lt.s32.totalorder %s37_s12, %s37_s12 }
   0x8   :  { %p1865_p0 = scmp.ne.s32.totalorder %s37_s12, %s1864_s15  ;;  %p1870_p2 = scmp.lt.s32.totalorder %s1864_s15, %s1864_s15 }
   0xa   :  { %p1871_p3 = por %p1870_p2, %p1869_p1 }
   0xc   :  { %p1872_p4 = pnand %p1871_p3, %p1865_p0 }
   0xe   :  { %1875 = shalt.err (!%p1872_p4)
}
   0xf   :  { %s1964_s16 = smov 64   ;;  %s1965_s17 = smov 4  }
  0x10   :  { %42 = dma.hbm_to_vmem [thread:$0]  %s2317_s1, 128, %s37_s12, [#allocation7], %s1964_s16, %s1964_s16, %s1965_s17  }
  0x11   :  { %s1884_s19 = scalar_lea.vmem %s63_s14, 256  ;;  %p1889_p6 = scmp.lt.s32.totalorder %s63_s14, %s63_s14 }
  0x12   :  { %p1885_p5 = scmp.ne.s32.totalorder %s63_s14, %s1884_s19  ;;  %p1890_p7 = scmp.lt.s32.totalorder %s1884_s19, %s1884_s19 }
  0x14   :  { %p1891_p8 = por %p1890_p7, %p1889_p6 }
  0x16   :  { %p1892_p9 = pnand %p1891_p8, %p1885_p5 }
  0x18   :  { %1895 = shalt.err (!%p1892_p9)
}
  0x19   :  { %68 = dma.hbm_to_vmem [thread:$0]  %s2320_s4, 256, %s63_s14, [#allocation10], %s1964_s16, %s1964_s16, %s1965_s17  }
  0x1a   :  { %s1966_s22 = smov [#allocation4]   ;;  %s1967_s24 = smov [#allocation8]  }
  0x1b   :  { %s24_s23 = sshll.u32 %s1966_s22, 4  ;;  %s48_s25 = sshll.u32 %s1967_s24, 4  ;;  %s25_s23 = int_to_ptr.vmem [resolvable:$true] %s24_s23  ;;  %s49_s25 = int_to_ptr.vmem [resolvable:$true] %s48_s25 }
  0x1c   :  { %s1904_s1 = scalar_lea.vmem %s25_s23, 128  ;;  %p1909_p11 = scmp.lt.s32.totalorder %s25_s23, %s25_s23 }
  0x1d   :  { %p1905_p10 = scmp.ne.s32.totalorder %s25_s23, %s1904_s1  ;;  %p1910_p12 = scmp.lt.s32.totalorder %s1904_s1, %s1904_s1 }
  0x1f   :  { %p1911_p13 = por %p1910_p12, %p1909_p11 }
  0x21   :  { %p1912_p0 = pnand %p1911_p13, %p1905_p10 }
  0x23   :  { %1915 = shalt.err (!%p1912_p0)
}
  0x24   :  { %30 = dma.hbm_to_vmem [thread:$0]  %s2316_s0, 128, %s25_s23, [#allocation5], %s1964_s16, %s1964_s16, %s1965_s17  }
  0x25   :  { %s1924_s4 = scalar_lea.vmem %s49_s25, 256  ;;  %p1929_p2 = scmp.lt.s32.totalorder %s49_s25, %s49_s25 }
  0x26   :  { %p1925_p1 = scmp.ne.s32.totalorder %s49_s25, %s1924_s4  ;;  %p1930_p3 = scmp.lt.s32.totalorder %s1924_s4, %s1924_s4 }
  0x28   :  { %p1931_p4 = por %p1930_p3, %p1929_p2 }
  0x2a   :  { %p1932_p5 = pnand %p1931_p4, %p1925_p1 }
  0x2c   :  { %1935 = shalt.err (!%p1932_p5)
}
  0x2d   :  { %54 = dma.hbm_to_vmem [thread:$0]  %s2318_s2, 256, %s49_s25, [#allocation7], %s1964_s16, %s1964_s16, %s1965_s17  }
  0x2e   :  { %s1968_s30 = smov [#allocation11]  }
  0x2f   :  { %s74_s10 = sshll.u32 %s1968_s30, 4  ;;  %s75_s10 = int_to_ptr.vmem [resolvable:$true] %s74_s10 }
  0x30   :  { %s1944_s11 = scalar_lea.vmem %s75_s10, 256  ;;  %p1949_p7 = scmp.lt.s32.totalorder %s75_s10, %s75_s10 }
  0x31   :  { %p1945_p6 = scmp.ne.s32.totalorder %s75_s10, %s1944_s11  ;;  %p1950_p8 = scmp.lt.s32.totalorder %s1944_s11, %s1944_s11 }
  0x33   :  { %p1951_p9 = por %p1950_p8, %p1949_p7 }
  0x35   :  { %p1952_p10 = pnand %p1951_p9, %p1945_p6 }
  0x37   :  { %1955 = shalt.err (!%p1952_p10)
}
  0x38   :  { %80 = dma.hbm_to_vmem [thread:$0]  %s2321_s5, 256, %s75_s10, [#allocation10], %s1964_s16, %s1964_s16, %s1965_s17  }
  0x39   :  { %1956 = dma.done.wait [#allocation5], 128  }
  0x3a   :  { %1957 = vsyncadd [#allocation5], 4294967168 }
  0x3b   :  { %1958 = dma.done.wait [#allocation7], 384  }
  0x3c   :  { %1959 = vsyncadd [#allocation7], 4294966912 }
  0x3d   :  { %1960 = dma.done.wait [#allocation10], 512  }
  0x3e   :  { %1961 = vsyncadd [#allocation10], 4294966784  ;;  %v1969_v1 = vmov 0.0   ;;  %vm1970_vm0 = vmmov 0   ;;  %v1783_v2 = vld [vmem:[#allocation6] sm:$0xff]   ;;  %v2063_v3 = vld [vmem:[#allocation8 + $0x8] sm:$0xff]  }
  0x3f   :  { %1629 = vmatprep.subr.bf16.mxu0 %v1969_v1  ;;  %1635 = vmatprep.subr.bf16.mxu1 %v1969_v1  ;;  %v1785_v4 = vld [vmem:[#allocation4] sm:$0xff]   ;;  %vm129_vm1 = vcmask 130048   ;;  %v2066_v5 = vld [vmem:[#allocation8] sm:$0xff]   ;;  %v1971_v6 = vmov 0   ;;  %vm186_vm2 = vcmask 261120   ;;  %vm258_vm3 = vcmask 253952  }
  0x40   :  { %1631 = vmatprep.mubr.msk.bf16.mxu0 %vm1970_vm0, %v1969_v1  ;;  %1639 = vmatprep.mubr.msk.bf16.mxu1 %vm1970_vm0, %v1969_v1  ;;  %v1531_v7 = vld [vmem:[%s2319_s3] ss:$0 sm:$0xff]  ;;  %s1972_s3 = smov 32   ;;  %vm421_vm4 = vcmask 256002   ;;  %vm339_vm5 = vcmask 254977   ;;  %vm503_vm6 = vcmask 257027  }
  0x41   :  { %1630 = vmatpush3.bf16.msra.mxu0 %v1783_v2  ;;  %1636 = vmatpush3.bf16.msra.mxu1 %v2063_v3  ;;  %s1973_s17 = smov 96   ;;  %vm1510_vm7 = vcmask 261126   ;;  %vm1522_vm8 = vcmask 7174  }
  0x42   :  { %1643 = vmatprep.subr.bf16.mxu0 %v1969_v1  ;;  %1637 = vmatprep.subr.bf16.mxu1 %v1969_v1 }
  0x44   :  { %1632 = vmatmul.mubr.msk.bf16.vlgmr.msra.gmra.mxu0 %vm129_vm1, %v1785_v4 }
  0x45   :  { %1644 = vmatpush3.bf16.msra.mxu0 %v2063_v3  ;;  %1647 = vmatprep.mubr.msk.bf16.mxu0 %vm1970_vm0, %v1969_v1 }
  0x46   :  { %1638 = vmatpush3.bf16.msra.mxu1 %v2066_v5  ;;  %1645 = vmatprep.subr.bf16.mxu0 %v1969_v1 }
  0x47   :  { %1651 = vmatprep.subr.bf16.mxu1 %v1969_v1 }
  0x49   :  { %1640 = vmatmul.mubr.bf16.vlgmr.msra.gmra.mxu1 %v1971_v6  ;;  %1646 = vmatpush3.bf16.msra.mxu0 %v2066_v5 }
  0x4a   :  { %1652 = vmatpush3.bf16.msra.mxu1 %v2063_v3  ;;  %1655 = vmatprep.mubr.msk.bf16.mxu1 %vm1970_vm0, %v1969_v1 }
  0x4b   :  { %1653 = vmatprep.subr.bf16.mxu1 %v1969_v1  ;;  %1659 = vmatprep.subr.bf16.mxu0 %v1969_v1 }
  0x4e   :  { %1654 = vmatpush3.bf16.msra.mxu1 %v2066_v5 }
  0x4f   :  { %1667 = vmatprep.subr.bf16.mxu1 %v1969_v1 }
 0x104   :  { %v167_v8 = vpop.f32.mrf.mxu0 }
 0x105   :  { %v2088_v9 = vadd.f32 %v1531_v7, %v167_v8 }
 0x106   :  { %v1633_v10 = vpop.f32.mrf.mxu0 }
 0x108   :  { %v170_v11 = vpop.f32.mrf.mxu0 }
 0x109   :  { %v2090_v12 = vadd.f32 %v1531_v7, %v170_v11  ;;  %v224_v13 = vpop.f32.mrf.mxu1 }
 0x10a   :  { %v230_v14 = vadd.f32 %v224_v13, %v2088_v9  ;;  %v1634_v15 = vpop.f32.mrf.mxu0 }
 0x10b   :  { %v1641_v16 = vpop.f32.mrf.mxu1 }
 0x10c   :  { %1792 = vtanh.f32 %v230_v14 }
 0x10d   :  { %v227_v17 = vpop.f32.mrf.mxu1 }
 0x10f   :  { %v1642_v18 = vpop.f32.mrf.mxu1 }
 0x119   :  { %v1793_v19 = vpop.eup %1792 }
 0x11a   :  { %236 = vrot.lane.b32.xlu0 %v1793_v19, %s1964_s16  ;;  %v232_v20 = vmul.f32 0.5, %v1793_v19 }
 0x11c   :  { %v233_v21 = vadd.f32 0.5, %v232_v20 }
 0x11e   :  { %v234_v24 = vmul.f32 0.0, %v233_v21 }
 0x18c   :  { %v237_v22 = vpop.permute.xlu0 %236 }
 0x18d   :  { %v239_v23 = vmul.f32 %v237_v22, %v233_v21 }
 0x18f   :  { %241 = vrot.lane.b32.xlu0 %v239_v23, %s1972_s3 }
 0x201   :  { %v242_v25 = vpop.permute.xlu0 %241 }
 0x202   :  { %v244_v26 = vadd.f32 %v242_v25, %v234_v24 }
 0x204   :  { %1794 = vtanh.f32 %v244_v26  ;;  %v313_v43 = vrot.slane %v244_v26, 6 }
 0x211   :  { %v1795_v27 = vpop.eup %1794 }
 0x212   :  { %247 = vrot.lane.b32.xlu1 %v1795_v27, %s1964_s16 }
 0x284   :  { %v248_v28 = vpop.permute.xlu1 %247 }
 0x285   :  { %v250_v29 = vmul.f32 %v248_v28, %v233_v21 }
 0x287   :  { %v2096_v30 = vpack.c.bf16 %v250_v29, %v250_v29 }
 0x289   :  { %260 = vrot.lane.b32.xlu1 %v2096_v30, %s1972_s3 }
 0x2fb   :  { %v261_v31 = vpop.permute.xlu1 %260 }
 0x2fc   :  { %1648 = vmatmul.mubr.msk.bf16.vlgmr.msra.gmra.mxu0 %vm186_vm2, %v261_v31 }
 0x2fd   :  { %1660 = vmatpush3.bf16.msra.mxu0 %v2063_v3  ;;  %1663 = vmatprep.mubr.msk.bf16.mxu0 %vm1970_vm0, %v1969_v1 }
 0x2fe   :  { %1661 = vmatprep.subr.bf16.mxu0 %v1969_v1 }
 0x301   :  { %1662 = vmatpush3.bf16.msra.mxu0 %v2066_v5 }
 0x302   :  { %1675 = vmatprep.subr.bf16.mxu0 %v1969_v1 }
 0x3bc   :  { %v299_v32 = vpop.f32.mrf.mxu0 }
 0x3bd   :  { %v306_v33 = vrot.slane %v299_v32, 6 }
 0x3be   :  { %v1649_v34 = vpop.f32.mrf.mxu0 }
 0x3bf   :  { %v308_v35 = vadd.f32 %v306_v33, %v2088_v9 }
 0x3c0   :  { %v302_v36 = vpop.f32.mrf.mxu0 }
 0x3c1   :  { %1796 = vtanh.f32 %v308_v35 }
 0x3c2   :  { %v1650_v37 = vpop.f32.mrf.mxu0 }
 0x3ce   :  { %v1797_v38 = vpop.eup %1796 }
 0x3cf   :  { %317 = vrot.lane.b32.xlu0 %v1797_v38, %s1964_s16  ;;  %v310_v39 = vmul.f32 0.5, %v1797_v38 }
 0x3d1   :  { %v311_v40 = vadd.f32 0.5, %v310_v39 }
 0x3d3   :  { %v315_v44 = vmul.f32 %v313_v43, %v311_v40 }
 0x441   :  { %v318_v41 = vpop.permute.xlu0 %317 }
 0x442   :  { %v320_v42 = vmul.f32 %v318_v41, %v311_v40 }
 0x444   :  { %322 = vrot.lane.b32.xlu1 %v320_v42, %s1972_s3 }
 0x4b6   :  { %v323_v45 = vpop.permute.xlu1 %322 }
 0x4b7   :  { %v325_v46 = vadd.f32 %v323_v45, %v315_v44 }
 0x4b9   :  { %1798 = vtanh.f32 %v325_v46  ;;  %v395_v0 = vrot.slane %v325_v46, 6 }
 0x4c6   :  { %v1799_v47 = vpop.eup %1798 }
 0x4c7   :  { %328 = vrot.lane.b32.xlu0 %v1799_v47, %s1964_s16 }
 0x539   :  { %v329_v48 = vpop.permute.xlu0 %328 }
 0x53a   :  { %v331_v49 = vmul.f32 %v329_v48, %v311_v40 }
 0x53c   :  { %v2111_v50 = vpack.c.bf16 %v331_v49, %v331_v49 }
 0x53e   :  { %v341_v51 = vrot.slane %v2111_v50, 1 }
 0x540   :  { %342 = vrot.lane.b32.xlu1 %v341_v51, %s1972_s3 }
 0x5b2   :  { %v343_v52 = vpop.permute.xlu1 %342 }
 0x5b3   :  { %1656 = vmatmul.mubr.msk.bf16.vlgmr.msra.gmra.mxu1 %vm186_vm2, %v343_v52 }
 0x5b4   :  { %1668 = vmatpush3.bf16.msra.mxu1 %v2063_v3  ;;  %1671 = vmatprep.mubr.msk.bf16.mxu1 %vm1970_vm0, %v1969_v1 }
 0x5b5   :  { %1669 = vmatprep.subr.bf16.mxu1 %v1969_v1 }
 0x5b8   :  { %1670 = vmatpush3.bf16.msra.mxu1 %v2066_v5 }
 0x5b9   :  { %1683 = vmatprep.subr.bf16.mxu1 %v1969_v1 }
 0x673   :  { %v381_v53 = vpop.f32.mrf.mxu1 }
 0x674   :  { %v388_v54 = vrot.slane %v381_v53, 4 }
 0x675   :  { %v1657_v55 = vpop.f32.mrf.mxu1 }
 0x676   :  { %v390_v56 = vadd.f32 %v388_v54, %v2088_v9 }
 0x677   :  { %v384_v57 = vpop.f32.mrf.mxu1 }
 0x678   :  { %1800 = vtanh.f32 %v390_v56 }
 0x679   :  { %v1658_v58 = vpop.f32.mrf.mxu1 }
 0x685   :  { %v1801_v59 = vpop.eup %1800 }
 0x686   :  { %399 = vrot.lane.b32.xlu0 %v1801_v59, %s1964_s16  ;;  %v392_v60 = vmul.f32 0.5, %v1801_v59 }
 0x688   :  { %v393_v61 = vadd.f32 0.5, %v392_v60 }
 0x68a   :  { %v397_v2 = vmul.f32 %v395_v0, %v393_v61 }
 0x6f8   :  { %v400_v62 = vpop.permute.xlu0 %399 }
 0x6f9   :  { %v402_v63 = vmul.f32 %v400_v62, %v393_v61 }
 0x6fb   :  { %404 = vrot.lane.b32.xlu1 %v402_v63, %s1972_s3 }
 0x76d   :  { %v405_v4 = vpop.permute.xlu1 %404 }
 0x76e   :  { %v407_v7 = vadd.f32 %v405_v4, %v397_v2 }
 0x770   :  { %1802 = vtanh.f32 %v407_v7  ;;  %v477_v27 = vrot.slane %v407_v7, 6 }
 0x77d   :  { %v1803_v8 = vpop.eup %1802 }
 0x77e   :  { %410 = vrot.lane.b32.xlu0 %v1803_v8, %s1964_s16 }
 0x7f0   :  { %v411_v10 = vpop.permute.xlu0 %410 }
 0x7f1   :  { %v413_v11 = vmul.f32 %v411_v10, %v393_v61 }
 0x7f3   :  { %v2126_v13 = vpack.c.bf16 %v413_v11, %v413_v11 }
 0x7f5   :  { %v423_v14 = vrot.slane %v2126_v13, 2 }
 0x7f7   :  { %424 = vrot.lane.b32.xlu1 %v423_v14, %s1972_s3 }
 0x869   :  { %v425_v15 = vpop.permute.xlu1 %424 }
 0x86a   :  { %1664 = vmatmul.mubr.msk.bf16.vlgmr.msra.gmra.mxu0 %vm186_vm2, %v425_v15 }
 0x86b   :  { %1676 = vmatpush3.bf16.msra.mxu0 %v2063_v3  ;;  %1679 = vmatprep.mubr.msk.bf16.mxu0 %vm1970_vm0, %v1969_v1 }
 0x86c   :  { %1677 = vmatprep.subr.bf16.mxu0 %v1969_v1 }
 0x86f   :  { %1678 = vmatpush3.bf16.msra.mxu0 %v2066_v5 }
 0x870   :  { %1691 = vmatprep.subr.bf16.mxu0 %v1969_v1 }
 0x92a   :  { %v463_v16 = vpop.f32.mrf.mxu0 }
 0x92b   :  { %v470_v17 = vrot.slane %v463_v16, 2 }
 0x92c   :  { %v1665_v18 = vpop.f32.mrf.mxu0 }
 0x92d   :  { %v472_v19 = vadd.f32 %v470_v17, %v2088_v9 }
 0x92e   :  { %v466_v20 = vpop.f32.mrf.mxu0 }
 0x92f   :  { %1804 = vtanh.f32 %v472_v19 }
 0x930   :  { %v1666_v21 = vpop.f32.mrf.mxu0 }
 0x93c   :  { %v1805_v22 = vpop.eup %1804 }
 0x93d   :  { %481 = vrot.lane.b32.xlu0 %v1805_v22, %s1964_s16  ;;  %v474_v23 = vmul.f32 0.5, %v1805_v22 }
 0x93f   :  { %v475_v24 = vadd.f32 0.5, %v474_v23 }
 0x941   :  { %v479_v28 = vmul.f32 %v477_v27, %v475_v24 }
 0x9af   :  { %v482_v25 = vpop.permute.xlu0 %481 }
 0x9b0   :  { %v484_v26 = vmul.f32 %v482_v25, %v475_v24 }
 0x9b2   :  { %486 = vrot.lane.b32.xlu1 %v484_v26, %s1972_s3 }
 0xa24   :  { %v487_v29 = vpop.permute.xlu1 %486 }
 0xa25   :  { %v489_v31 = vadd.f32 %v487_v29, %v479_v28 }
 0xa27   :  { %1806 = vtanh.f32 %v489_v31  ;;  %v556_v47 = vrot.slane %v489_v31, 6 }
 0xa34   :  { %v1807_v32 = vpop.eup %1806 }
 0xa35   :  { %492 = vrot.lane.b32.xlu0 %v1807_v32, %s1964_s16 }
 0xaa7   :  { %v493_v9 = vpop.permute.xlu0 %492 }
 0xaa8   :  { %v495_v33 = vmul.f32 %v493_v9, %v475_v24 }
 0xaaa   :  { %v2141_v34 = vpack.c.bf16 %v495_v33, %v495_v33 }
 0xaac   :  { %v505_v35 = vrot.slane %v2141_v34, 3 }
 0xaae   :  { %506 = vrot.lane.b32.xlu1 %v505_v35, %s1972_s3 }
 0xb20   :  { %v507_v36 = vpop.permute.xlu1 %506 }
 0xb21   :  { %1672 = vmatmul.mubr.msk.bf16.vlgmr.msra.gmra.mxu1 %vm186_vm2, %v507_v36 }
 0xb22   :  { %1684 = vmatpush3.bf16.msra.mxu1 %v2063_v3  ;;  %1687 = vmatprep.mubr.msk.bf16.mxu1 %vm1970_vm0, %v1969_v1 }
 0xb23   :  { %1685 = vmatprep.subr.bf16.mxu1 %v1969_v1 }
 0xb26   :  { %1686 = vmatpush3.bf16.msra.mxu1 %v2066_v5 }
 0xb27   :  { %1699 = vmatprep.subr.bf16.mxu1 %v1969_v1 }
 0xbe1   :  { %v545_v37 = vpop.f32.mrf.mxu1 }
 0xbe2   :  { %v551_v38 = vadd.f32 %v545_v37, %v2090_v12 }
 0xbe3   :  { %v1673_v39 = vpop.f32.mrf.mxu1 }
 0xbe4   :  { %1808 = vtanh.f32 %v551_v38 }
 0xbe5   :  { %v548_v40 = vpop.f32.mrf.mxu1 }
 0xbe7   :  { %v1674_v41 = vpop.f32.mrf.mxu1 }
 0xbf1   :  { %v1809_v42 = vpop.eup %1808 }
 0xbf2   :  { %560 = vrot.lane.b32.xlu0 %v1809_v42, %s1964_s16  ;;  %v553_v43 = vmul.f32 0.5, %v1809_v42 }
 0xbf4   :  { %v554_v44 = vadd.f32 0.5, %v553_v43 }
 0xbf6   :  { %v558_v48 = vmul.f32 %v556_v47, %v554_v44 }
 0xc64   :  { %v561_v45 = vpop.permute.xlu0 %560 }
 0xc65   :  { %v563_v46 = vmul.f32 %v561_v45, %v554_v44 }
 0xc67   :  { %565 = vrot.lane.b32.xlu1 %v563_v46, %s1972_s3 }
 0xcd9   :  { %v566_v49 = vpop.permute.xlu1 %565 }
 0xcda   :  { %v568_v51 = vadd.f32 %v566_v49, %v558_v48 }
 0xcdc   :  { %1810 = vtanh.f32 %v568_v51 }
 0xce9   :  { %v1811_v52 = vpop.eup %1810 }
 0xcea   :  { %571 = vrot.lane.b32.xlu0 %v1811_v52, %s1964_s16 }
 0xd5c   :  { %v572_v53 = vpop.permute.xlu0 %571 }
 0xd5d   :  { %v574_v54 = vmul.f32 %v572_v53, %v554_v44 }
 0xd5f   :  { %v2156_v55 = vpack.c.bf16 %v574_v54, %v574_v54 }
 0xd61   :  { %583 = vrot.lane.b32.xlu1 %v2156_v55, %s1972_s3 }
 0xdd3   :  { %v584_v56 = vpop.permute.xlu1 %583 }
 0xdd4   :  { %1680 = vmatmul.mubr.msk.bf16.vlgmr.msra.gmra.mxu0 %vm186_vm2, %v584_v56 }
 0xdd5   :  { %1692 = vmatpush3.bf16.msra.mxu0 %v2063_v3  ;;  %1695 = vmatprep.mubr.msk.bf16.mxu0 %vm1970_vm0, %v1969_v1 }
 0xdd6   :  { %1693 = vmatprep.subr.bf16.mxu0 %v1969_v1 }
 0xdd9   :  { %1694 = vmatpush3.bf16.msra.mxu0 %v2066_v5  ;;  %v636_v5 = vrot.slane %v568_v51, 6 }
 0xdda   :  { %1707 = vmatprep.subr.bf16.mxu0 %v1969_v1 }
 0xe94   :  { %v622_v57 = vpop.f32.mrf.mxu0 }
 0xe95   :  { %v629_v58 = vrot.slane %v622_v57, 6 }
 0xe96   :  { %v1681_v59 = vpop.f32.mrf.mxu0 }
 0xe97   :  { %v631_v60 = vadd.f32 %v629_v58, %v2090_v12 }
 0xe98   :  { %v625_v61 = vpop.f32.mrf.mxu0 }
 0xe99   :  { %1812 = vtanh.f32 %v631_v60  ;;  %v2196_v60 = vld [vmem:[#allocation11 + $0x8] sm:$0xff]   ;;  %v2207_v61 = vld [vmem:[#allocation11] sm:$0xff]  }
 0xe9a   :  { %v1682_v62 = vpop.f32.mrf.mxu0 }
 0xe9b   :  { %v1790_v62 = vld [vmem:[#allocation9] sm:$0xff]  }
 0xea6   :  { %v1813_v63 = vpop.eup %1812 }
 0xea7   :  { %640 = vrot.lane.b32.xlu0 %v1813_v63, %s1964_s16  ;;  %v633_v3 = vmul.f32 0.5, %v1813_v63 }
 0xea9   :  { %v634_v0 = vadd.f32 0.5, %v633_v3 }
 0xeab   :  { %v638_v7 = vmul.f32 %v636_v5, %v634_v0 }
 0xf19   :  { %v641_v2 = vpop.permute.xlu0 %640 }
 0xf1a   :  { %v643_v4 = vmul.f32 %v641_v2, %v634_v0 }
 0xf1c   :  { %645 = vrot.lane.b32.xlu1 %v643_v4, %s1972_s3 }
 0xf8e   :  { %v646_v8 = vpop.permute.xlu1 %645 }
 0xf8f   :  { %v648_v10 = vadd.f32 %v646_v8, %v638_v7 }
 0xf91   :  { %1814 = vtanh.f32 %v648_v10  ;;  %v717_v31 = vrot.slane %v648_v10, 6 }
 0xf9e   :  { %v1815_v11 = vpop.eup %1814 }
 0xf9f   :  { %651 = vrot.lane.b32.xlu0 %v1815_v11, %s1964_s16  ;;  %v1552_v11 = vld [vmem:[%s2322_s6] ss:$0 sm:$0xff] }
0x1011   :  { %v652_v14 = vpop.permute.xlu0 %651 }
0x1012   :  { %v654_v15 = vmul.f32 %v652_v14, %v634_v0 }
0x1014   :  { %v2171_v16 = vpack.c.bf16 %v654_v15, %v654_v15 }
0x1016   :  { %v663_v17 = vrot.slane %v2171_v16, 1 }
0x1018   :  { %664 = vrot.lane.b32.xlu1 %v663_v17, %s1972_s3 }
0x108a   :  { %v665_v18 = vpop.permute.xlu1 %664 }
0x108b   :  { %1688 = vmatmul.mubr.msk.bf16.vlgmr.msra.gmra.mxu1 %vm186_vm2, %v665_v18 }
0x108c   :  { %1703 = vmatprep.mubr.msk.bf16.mxu1 %vm1970_vm0, %v1969_v1 }
0x114b   :  { %v703_v19 = vpop.f32.mrf.mxu1 }
0x114c   :  { %v710_v20 = vrot.slane %v703_v19, 4 }
0x114d   :  { %v1689_v21 = vpop.f32.mrf.mxu1 }
0x114e   :  { %v712_v22 = vadd.f32 %v710_v20, %v2090_v12 }
0x114f   :  { %v706_v23 = vpop.f32.mrf.mxu1 }
0x1150   :  { %1816 = vtanh.f32 %v712_v22 }
0x1151   :  { %v1690_v24 = vpop.f32.mrf.mxu1 }
0x115d   :  { %v1817_v25 = vpop.eup %1816 }
0x115e   :  { %721 = vrot.lane.b32.xlu0 %v1817_v25, %s1964_s16  ;;  %v714_v26 = vmul.f32 0.5, %v1817_v25 }
0x1160   :  { %v715_v27 = vadd.f32 0.5, %v714_v26 }
0x1162   :  { %v719_v32 = vmul.f32 %v717_v31, %v715_v27 }
0x11d0   :  { %v722_v28 = vpop.permute.xlu0 %721 }
0x11d1   :  { %v724_v29 = vmul.f32 %v722_v28, %v715_v27 }
0x11d3   :  { %726 = vrot.lane.b32.xlu1 %v724_v29, %s1972_s3 }
0x1245   :  { %v727_v9 = vpop.permute.xlu1 %726 }
0x1246   :  { %v729_v33 = vadd.f32 %v727_v9, %v719_v32 }
0x1248   :  { %1818 = vtanh.f32 %v729_v33 }
0x1255   :  { %v1819_v35 = vpop.eup %1818 }
0x1256   :  { %732 = vrot.lane.b32.xlu0 %v1819_v35, %s1964_s16 }
0x12c8   :  { %v733_v36 = vpop.permute.xlu0 %732 }
0x12c9   :  { %v735_v37 = vmul.f32 %v733_v36, %v715_v27 }
0x12cb   :  { %v736_v38 = vpack.c.bf16 %v735_v37, %v735_v37 }
0x12cd   :  { %v744_v39 = vrot.slane %v736_v38, 2 }
0x12cf   :  { %745 = vrot.lane.b32.xlu1 %v744_v39, %s1972_s3 }
0x1341   :  { %v746_v40 = vpop.permute.xlu1 %745 }
0x1342   :  { %1696 = vmatmul.mubr.msk.bf16.vlgmr.msra.gmra.mxu0 %vm186_vm2, %v746_v40 }
0x1343   :  { %1711 = vmatprep.mubr.msk.bf16.mxu0 %vm1970_vm0, %v1969_v1  ;;  %1708 = vmatpush3.bf16.msra.mxu0 %v2196_v60 }
0x1344   :  { %1709 = vmatprep.subr.bf16.mxu0 %v1969_v1 }
0x1347   :  { %1710 = vmatpush3.bf16.msra.mxu0 %v2207_v61 }
0x1348   :  { %1723 = vmatprep.subr.bf16.mxu0 %v1969_v1 }
0x134a   :  { %1712 = vmatmul.mubr.bf16.vlgmr.msra.gmra.mxu0 %v1971_v6 }
0x134b   :  { %1724 = vmatpush3.bf16.msra.mxu0 %v2196_v60  ;;  %1727 = vmatprep.mubr.msk.bf16.mxu0 %vm1970_vm0, %v1969_v1 }
0x134c   :  { %1725 = vmatprep.subr.bf16.mxu0 %v1969_v1 }
0x134f   :  { %1726 = vmatpush3.bf16.msra.mxu0 %v2207_v61 }
0x1350   :  { %1739 = vmatprep.subr.bf16.mxu0 %v1969_v1 }
0x1402   :  { %v784_v41 = vpop.f32.mrf.mxu0 }
0x1403   :  { %v791_v42 = vrot.slane %v784_v41, 2 }
0x1404   :  { %v1697_v43 = vpop.f32.mrf.mxu0 }
0x1405   :  { %v793_v44 = vadd.f32 %v791_v42, %v2090_v12  ;;  %v798_v12 = vrot.slane %v729_v33, 6 }
0x1406   :  { %v787_v45 = vpop.f32.mrf.mxu0 }
0x1407   :  { %1820 = vtanh.f32 %v793_v44 }
0x1408   :  { %v1698_v46 = vpop.f32.mrf.mxu0 }
0x140a   :  { %v949_v5 = vpop.f32.mrf.mxu0 }
0x140c   :  { %v1713_v7 = vpop.f32.mrf.mxu0 }
0x140e   :  { %v952_v8 = vpop.f32.mrf.mxu0 }
0x1410   :  { %v1714_v10 = vpop.f32.mrf.mxu0 }
0x1414   :  { %v1821_v47 = vpop.eup %1820 }
0x1415   :  { %802 = vrot.lane.b32.xlu0 %v1821_v47, %s1964_s16  ;;  %v795_v48 = vmul.f32 0.5, %v1821_v47 }
0x1417   :  { %v796_v49 = vadd.f32 0.5, %v795_v48 }
0x1419   :  { %v800_v53 = vmul.f32 %v798_v12, %v796_v49 }
0x1487   :  { %v803_v51 = vpop.permute.xlu0 %802 }
0x1488   :  { %v805_v52 = vmul.f32 %v803_v51, %v796_v49 }
0x148a   :  { %807 = vrot.lane.b32.xlu1 %v805_v52, %s1972_s3 }
0x148e   :  { %255 = vrot.lane.b32.xlu1 %v2096_v30, %s1972_s3 }
0x1492   :  { %418 = vrot.lane.b32.xlu1 %v2126_v13, %s1972_s3 }
0x1496   :  { %579 = vrot.lane.b32.xlu1 %v2156_v55, %s1972_s3  ;;  %v1788_v55 = vld [vmem:[#allocation9 + $0x8] sm:$0xff]  }
0x1497   :  { %1700 = vmatpush3.bf16.msra.mxu1 %v1788_v55 }
0x1498   :  { %1701 = vmatprep.subr.bf16.mxu1 %v1969_v1 }
0x149a   :  { %740 = vrot.lane.b32.xlu1 %v736_v38, %s1972_s3 }
0x149b   :  { %1702 = vmatpush3.bf16.msra.mxu1 %v1790_v62 }
0x149c   :  { %1715 = vmatprep.subr.bf16.mxu1 %v1969_v1 }
0x14fc   :  { %v808_v54 = vpop.permute.xlu1 %807 }
0x14fd   :  { %v810_v56 = vadd.f32 %v808_v54, %v800_v53 }
0x14ff   :  { %1822 = vtanh.f32 %v810_v56 }
0x1500   :  { %v256_v57 = vpop.permute.xlu1 %255 }
0x1501   :  { %259 = vst.msk [vmem:[#allocation2] sm:$0x1] %vm258_vm3, %v256_v57 }
0x1504   :  { %v419_v58 = vpop.permute.xlu1 %418 }
0x1505   :  { %422 = vst.msk [vmem:[#allocation2] sm:$0x4] %vm421_vm4, %v419_v58 }
0x1508   :  { %v580_v30 = vpop.permute.xlu1 %579 }
0x1509   :  { %582 = vst.msk [vmem:[#allocation2 + $0x4] sm:$0x1] %vm258_vm3, %v580_v30 }
0x150c   :  { %v1823_v59 = vpop.eup %1822  ;;  %v741_v13 = vpop.permute.xlu1 %740 }
0x150d   :  { %743 = vst.msk [vmem:[#allocation2 + $0x4] sm:$0x4] %vm421_vm4, %v741_v13  ;;  %813 = vrot.lane.b32.xlu0 %v1823_v59, %s1964_s16 }
0x1511   :  { %336 = vrot.lane.b32.xlu0 %v2111_v50, %s1972_s3 }
0x1515   :  { %500 = vrot.lane.b32.xlu0 %v2141_v34, %s1972_s3 }
0x1519   :  { %659 = vrot.lane.b32.xlu0 %v2171_v16, %s1972_s3 }
0x157f   :  { %v814_v50 = vpop.permute.xlu0 %813 }
0x1580   :  { %v816_v34 = vmul.f32 %v814_v50, %v796_v49 }
0x1582   :  { %v1575_v63 = vpack.c.bf16 %v816_v34, %v816_v34 }
0x1583   :  { %v337_v3 = vpop.permute.xlu0 %336 }
0x1584   :  { %340 = vst.msk [vmem:[#allocation2] sm:$0x2] %vm339_vm5, %v337_v3  ;;  %821 = vrot.lane.b32.xlu0 %v1575_v63, %s1972_s3 }
0x1587   :  { %v501_v6 = vpop.permute.xlu0 %500 }
0x1588   :  { %504 = vst.msk [vmem:[#allocation2] sm:$0x8] %vm503_vm6, %v501_v6 }
0x158b   :  { %v660_v0 = vpop.permute.xlu0 %659 }
0x158c   :  { %662 = vst.msk [vmem:[#allocation2 + $0x4] sm:$0x2] %vm339_vm5, %v660_v0 }
0x15f6   :  { %v822_v2 = vpop.permute.xlu0 %821 }
0x15f7   :  { %824 = vst.msk [vmem:[#allocation2 + $0x4] sm:$0x8] %vm503_vm6, %v822_v2 }
0x15fe   :  { %v1791_v4 = vld [vmem:[#allocation2] sm:$0xff]  }
0x15ff   :  { %1704 = vmatmul.mubr.msk.bf16.vlgmr.msra.gmra.mxu1 %vm186_vm2, %v1791_v4 }
0x1600   :  { %1716 = vmatpush3.bf16.msra.mxu1 %v2196_v60  ;;  %1719 = vmatprep.mubr.msk.bf16.mxu1 %vm1970_vm0, %v1969_v1 }
0x1601   :  { %1717 = vmatprep.subr.bf16.mxu1 %v1969_v1 }
0x1604   :  { %1718 = vmatpush3.bf16.msra.mxu1 %v2207_v61 }
0x1605   :  { %1731 = vmatprep.subr.bf16.mxu1 %v1969_v1 }
0x16bf   :  { %v896_v14 = vpop.f32.mrf.mxu1 }
0x16c0   :  { %v2231_v15 = vadd.f32 %v1552_v11, %v896_v14 }
0x16c1   :  { %v1705_v16 = vpop.f32.mrf.mxu1 }
0x16c2   :  { %v955_v17 = vadd.f32 %v949_v5, %v2231_v15 }
0x16c3   :  { %v899_v18 = vpop.f32.mrf.mxu1 }
0x16c4   :  { %1824 = vtanh.f32 %v955_v17  ;;  %v2234_v19 = vadd.f32 %v1552_v11, %v899_v18 }
0x16c5   :  { %v1706_v20 = vpop.f32.mrf.mxu1 }
0x16d1   :  { %v1825_v21 = vpop.eup %1824 }
0x16d2   :  { %961 = vrot.lane.b32.xlu1 %v1825_v21, %s1964_s16  ;;  %v957_v22 = vmul.f32 0.5, %v1825_v21 }
0x16d4   :  { %v958_v23 = vadd.f32 0.5, %v957_v22 }
0x16d6   :  { %v959_v26 = vmul.f32 0.0, %v958_v23 }
0x1744   :  { %v962_v24 = vpop.permute.xlu1 %961 }
0x1745   :  { %v964_v25 = vmul.f32 %v962_v24, %v958_v23 }
0x1747   :  { %966 = vrot.lane.b32.xlu0 %v964_v25, %s1972_s3 }
0x17b9   :  { %v967_v27 = vpop.permute.xlu0 %966 }
0x17ba   :  { %v969_v28 = vadd.f32 %v967_v27, %v959_v26 }
0x17bc   :  { %1826 = vtanh.f32 %v969_v28  ;;  %v1031_v46 = vrot.slane %v969_v28, 6 }
0x17c9   :  { %v1827_v29 = vpop.eup %1826 }
0x17ca   :  { %972 = vrot.lane.b32.xlu1 %v1827_v29, %s1964_s16 }
0x183c   :  { %v973_v31 = vpop.permute.xlu1 %972 }
0x183d   :  { %v975_v32 = vmul.f32 %v973_v31, %v958_v23 }
0x183f   :  { %v976_v9 = vpack.c.bf16 %v975_v32, %v975_v32 }
0x1841   :  { %978 = vrot.lane.b32.xlu0 %v976_v9, %s1972_s3 }
0x18b3   :  { %v979_v33 = vpop.permute.xlu0 %978 }
0x18b4   :  { %1720 = vmatmul.mubr.msk.bf16.vlgmr.msra.gmra.mxu1 %vm186_vm2, %v979_v33 }
0x18b5   :  { %1732 = vmatpush3.bf16.msra.mxu1 %v2196_v60  ;;  %1735 = vmatprep.mubr.msk.bf16.mxu1 %vm1970_vm0, %v1969_v1 }
0x18b6   :  { %1733 = vmatprep.subr.bf16.mxu1 %v1969_v1 }
0x18b9   :  { %1734 = vmatpush3.bf16.msra.mxu1 %v2207_v61 }
0x18ba   :  { %1747 = vmatprep.subr.bf16.mxu1 %v1969_v1 }
0x1974   :  { %v1017_v35 = vpop.f32.mrf.mxu1 }
0x1975   :  { %v1024_v36 = vrot.slane %v1017_v35, 6 }
0x1976   :  { %v1721_v37 = vpop.f32.mrf.mxu1 }
0x1977   :  { %v1026_v38 = vadd.f32 %v1024_v36, %v2231_v15 }
0x1978   :  { %v1020_v39 = vpop.f32.mrf.mxu1 }
0x1979   :  { %1828 = vtanh.f32 %v1026_v38 }
0x197a   :  { %v1722_v40 = vpop.f32.mrf.mxu1 }
0x1986   :  { %v1829_v41 = vpop.eup %1828 }
0x1987   :  { %1035 = vrot.lane.b32.xlu1 %v1829_v41, %s1964_s16  ;;  %v1028_v42 = vmul.f32 0.5, %v1829_v41 }
0x1989   :  { %v1029_v43 = vadd.f32 0.5, %v1028_v42 }
0x198b   :  { %v1033_v47 = vmul.f32 %v1031_v46, %v1029_v43 }
0x19f9   :  { %v1036_v44 = vpop.permute.xlu1 %1035 }
0x19fa   :  { %v1038_v45 = vmul.f32 %v1036_v44, %v1029_v43 }
0x19fc   :  { %1040 = vrot.lane.b32.xlu0 %v1038_v45, %s1972_s3 }
0x1a6e   :  { %v1041_v48 = vpop.permute.xlu0 %1040 }
0x1a6f   :  { %v1043_v49 = vadd.f32 %v1041_v48, %v1033_v47 }
0x1a71   :  { %1830 = vtanh.f32 %v1043_v49  ;;  %v1106_v6 = vrot.slane %v1043_v49, 6 }
0x1a7e   :  { %v1831_v51 = vpop.eup %1830 }
0x1a7f   :  { %1046 = vrot.lane.b32.xlu1 %v1831_v51, %s1964_s16 }
0x1af1   :  { %v1047_v52 = vpop.permute.xlu1 %1046 }
0x1af2   :  { %v1049_v12 = vmul.f32 %v1047_v52, %v1029_v43 }
0x1af4   :  { %v1050_v53 = vpack.c.bf16 %v1049_v12, %v1049_v12 }
0x1af6   :  { %v1052_v54 = vrot.slane %v1050_v53, 1 }
0x1af8   :  { %1053 = vrot.lane.b32.xlu0 %v1052_v54, %s1972_s3 }
0x1b6a   :  { %v1054_v56 = vpop.permute.xlu0 %1053 }
0x1b6b   :  { %1728 = vmatmul.mubr.msk.bf16.vlgmr.msra.gmra.mxu0 %vm186_vm2, %v1054_v56 }
0x1b6c   :  { %1740 = vmatpush3.bf16.msra.mxu0 %v2196_v60  ;;  %1743 = vmatprep.mubr.msk.bf16.mxu0 %vm1970_vm0, %v1969_v1 }
0x1b6d   :  { %1741 = vmatprep.subr.bf16.mxu0 %v1969_v1 }
0x1b70   :  { %1742 = vmatpush3.bf16.msra.mxu0 %v2207_v61 }
0x1b71   :  { %1755 = vmatprep.subr.bf16.mxu0 %v1969_v1 }
0x1c2b   :  { %v1092_v57 = vpop.f32.mrf.mxu0 }
0x1c2c   :  { %v1099_v58 = vrot.slane %v1092_v57, 4 }
0x1c2d   :  { %v1729_v30 = vpop.f32.mrf.mxu0 }
0x1c2e   :  { %v1101_v59 = vadd.f32 %v1099_v58, %v2231_v15 }
0x1c2f   :  { %v1095_v13 = vpop.f32.mrf.mxu0 }
0x1c30   :  { %1832 = vtanh.f32 %v1101_v59 }
0x1c31   :  { %v1730_v55 = vpop.f32.mrf.mxu0 }
0x1c3d   :  { %v1833_v62 = vpop.eup %1832 }
0x1c3e   :  { %1110 = vrot.lane.b32.xlu1 %v1833_v62, %s1964_s16  ;;  %v1103_v50 = vmul.f32 0.5, %v1833_v62 }
0x1c40   :  { %v1104_v34 = vadd.f32 0.5, %v1103_v50 }
0x1c42   :  { %v1108_v0 = vmul.f32 %v1106_v6, %v1104_v34 }
0x1cb0   :  { %v1111_v63 = vpop.permute.xlu1 %1110 }
0x1cb1   :  { %v1113_v3 = vmul.f32 %v1111_v63, %v1104_v34 }
0x1cb3   :  { %1115 = vrot.lane.b32.xlu0 %v1113_v3, %s1972_s3 }
0x1d25   :  { %v1116_v2 = vpop.permute.xlu0 %1115 }
0x1d26   :  { %v1118_v4 = vadd.f32 %v1116_v2, %v1108_v0 }
0x1d28   :  { %1834 = vtanh.f32 %v1118_v4  ;;  %v1181_v28 = vrot.slane %v1118_v4, 6 }
0x1d35   :  { %v1835_v5 = vpop.eup %1834 }
0x1d36   :  { %1121 = vrot.lane.b32.xlu1 %v1835_v5, %s1964_s16 }
0x1da8   :  { %v1122_v7 = vpop.permute.xlu1 %1121 }
0x1da9   :  { %v1124_v8 = vmul.f32 %v1122_v7, %v1104_v34 }
0x1dab   :  { %v1125_v10 = vpack.c.bf16 %v1124_v8, %v1124_v8 }
0x1dad   :  { %v1127_v11 = vrot.slane %v1125_v10, 2 }
0x1daf   :  { %1128 = vrot.lane.b32.xlu0 %v1127_v11, %s1972_s3 }
0x1e21   :  { %v1129_v14 = vpop.permute.xlu0 %1128 }
0x1e22   :  { %1736 = vmatmul.mubr.msk.bf16.vlgmr.msra.gmra.mxu1 %vm186_vm2, %v1129_v14 }
0x1e23   :  { %1748 = vmatpush3.bf16.msra.mxu1 %v2196_v60  ;;  %1751 = vmatprep.mubr.msk.bf16.mxu1 %vm1970_vm0, %v1969_v1 }
0x1e24   :  { %1749 = vmatprep.subr.bf16.mxu1 %v1969_v1 }
0x1e27   :  { %1750 = vmatpush3.bf16.msra.mxu1 %v2207_v61 }
0x1e28   :  { %1763 = vmatprep.subr.bf16.mxu1 %v1969_v1 }
0x1ee2   :  { %v1167_v16 = vpop.f32.mrf.mxu1 }
0x1ee3   :  { %v1174_v17 = vrot.slane %v1167_v16, 2 }
0x1ee4   :  { %v1737_v18 = vpop.f32.mrf.mxu1 }
0x1ee5   :  { %v1176_v20 = vadd.f32 %v1174_v17, %v2231_v15 }
0x1ee6   :  { %v1170_v21 = vpop.f32.mrf.mxu1 }
0x1ee7   :  { %1836 = vtanh.f32 %v1176_v20 }
0x1ee8   :  { %v1738_v22 = vpop.f32.mrf.mxu1 }
0x1ef4   :  { %v1837_v23 = vpop.eup %1836 }
0x1ef5   :  { %1185 = vrot.lane.b32.xlu1 %v1837_v23, %s1964_s16  ;;  %v1178_v24 = vmul.f32 0.5, %v1837_v23 }
0x1ef7   :  { %v1179_v25 = vadd.f32 0.5, %v1178_v24 }
0x1ef9   :  { %v1183_v29 = vmul.f32 %v1181_v28, %v1179_v25 }
0x1f67   :  { %v1186_v26 = vpop.permute.xlu1 %1185 }
0x1f68   :  { %v1188_v27 = vmul.f32 %v1186_v26, %v1179_v25 }
0x1f6a   :  { %1190 = vrot.lane.b32.xlu0 %v1188_v27, %s1972_s3 }
0x1fdc   :  { %v1191_v31 = vpop.permute.xlu0 %1190 }
0x1fdd   :  { %v1193_v32 = vadd.f32 %v1191_v31, %v1183_v29 }
0x1fdf   :  { %1838 = vtanh.f32 %v1193_v32  ;;  %v1253_v48 = vrot.slane %v1193_v32, 6 }
0x1fec   :  { %v1839_v9 = vpop.eup %1838 }
0x1fed   :  { %1196 = vrot.lane.b32.xlu1 %v1839_v9, %s1964_s16 }
0x205f   :  { %v1197_v15 = vpop.permute.xlu1 %1196 }
0x2060   :  { %v1199_v33 = vmul.f32 %v1197_v15, %v1179_v25 }
0x2062   :  { %v1200_v35 = vpack.c.bf16 %v1199_v33, %v1199_v33 }
0x2064   :  { %v1202_v36 = vrot.slane %v1200_v35, 3 }
0x2066   :  { %1203 = vrot.lane.b32.xlu0 %v1202_v36, %s1972_s3 }
0x20d8   :  { %v1204_v37 = vpop.permute.xlu0 %1203 }
0x20d9   :  { %1744 = vmatmul.mubr.msk.bf16.vlgmr.msra.gmra.mxu0 %vm186_vm2, %v1204_v37 }
0x20da   :  { %1756 = vmatpush3.bf16.msra.mxu0 %v2196_v60  ;;  %1759 = vmatprep.mubr.msk.bf16.mxu0 %vm1970_vm0, %v1969_v1 }
0x20db   :  { %1757 = vmatprep.subr.bf16.mxu0 %v1969_v1 }
0x20de   :  { %1758 = vmatpush3.bf16.msra.mxu0 %v2207_v61 }
0x2199   :  { %v1242_v38 = vpop.f32.mrf.mxu0 }
0x219a   :  { %v1248_v39 = vadd.f32 %v1242_v38, %v2234_v19 }
0x219b   :  { %v1745_v40 = vpop.f32.mrf.mxu0 }
0x219c   :  { %1840 = vtanh.f32 %v1248_v39 }
0x219d   :  { %v1245_v41 = vpop.f32.mrf.mxu0 }
0x219f   :  { %v1746_v42 = vpop.f32.mrf.mxu0 }
0x21a9   :  { %v1841_v43 = vpop.eup %1840 }
0x21aa   :  { %1257 = vrot.lane.b32.xlu1 %v1841_v43, %s1964_s16  ;;  %v1250_v44 = vmul.f32 0.5, %v1841_v43 }
0x21ac   :  { %v1251_v45 = vadd.f32 0.5, %v1250_v44 }
0x21ae   :  { %v1255_v49 = vmul.f32 %v1253_v48, %v1251_v45 }
0x221c   :  { %v1258_v46 = vpop.permute.xlu1 %1257 }
0x221d   :  { %v1260_v47 = vmul.f32 %v1258_v46, %v1251_v45 }
0x221f   :  { %1262 = vrot.lane.b32.xlu0 %v1260_v47, %s1972_s3  ;;  %v1566_v47 = vld [vmem:[%s2323_s7] ss:$0 sm:$0xff] }
0x2291   :  { %v1263_v51 = vpop.permute.xlu0 %1262 }
0x2292   :  { %v1265_v52 = vadd.f32 %v1263_v51, %v1255_v49 }
0x2294   :  { %1842 = vtanh.f32 %v1265_v52 }
0x22a1   :  { %v1843_v12 = vpop.eup %1842 }
0x22a2   :  { %1268 = vrot.lane.b32.xlu1 %v1843_v12, %s1964_s16 }
0x2314   :  { %v1269_v53 = vpop.permute.xlu1 %1268 }
0x2315   :  { %v1271_v54 = vmul.f32 %v1269_v53, %v1251_v45 }
0x2317   :  { %v1272_v56 = vpack.c.bf16 %v1271_v54, %v1271_v54 }
0x2319   :  { %1274 = vrot.lane.b32.xlu0 %v1272_v56, %s1972_s3 }
0x238b   :  { %v1275_v57 = vpop.permute.xlu0 %1274 }
0x238c   :  { %1752 = vmatmul.mubr.msk.bf16.vlgmr.msra.gmra.mxu1 %vm186_vm2, %v1275_v57 }
0x238d   :  { %1764 = vmatpush3.bf16.msra.mxu1 %v2196_v60  ;;  %1767 = vmatprep.mubr.msk.bf16.mxu1 %vm1970_vm0, %v1969_v1 }
0x238e   :  { %1765 = vmatprep.subr.bf16.mxu1 %v1969_v1  ;;  %v1327_v1 = vrot.slane %v1265_v52, 6 }
0x2391   :  { %1766 = vmatpush3.bf16.msra.mxu1 %v2207_v61 }
0x244c   :  { %v1313_v58 = vpop.f32.mrf.mxu1 }
0x244d   :  { %v1320_v30 = vrot.slane %v1313_v58, 6 }
0x244e   :  { %v1753_v59 = vpop.f32.mrf.mxu1 }
0x244f   :  { %v1322_v13 = vadd.f32 %v1320_v30, %v2234_v19  ;;  %v1567_v30 = vld [vmem:[#allocation3] ss:$0 sm:$0xff] }
0x2450   :  { %v1316_v55 = vpop.f32.mrf.mxu1 }
0x2451   :  { %1844 = vtanh.f32 %v1322_v13 }
0x2452   :  { %v1754_v62 = vpop.f32.mrf.mxu1 }
0x245e   :  { %v1845_v50 = vpop.eup %1844 }
0x245f   :  { %1331 = vrot.lane.b32.xlu1 %v1845_v50, %s1964_s16  ;;  %v1324_v34 = vmul.f32 0.5, %v1845_v50 }
0x2461   :  { %v1325_v60 = vadd.f32 0.5, %v1324_v34 }
0x2463   :  { %v1329_v6 = vmul.f32 %v1327_v1, %v1325_v60 }
0x24d1   :  { %v1332_v63 = vpop.permute.xlu1 %1331 }
0x24d2   :  { %v1334_v3 = vmul.f32 %v1332_v63, %v1325_v60 }
0x24d4   :  { %1336 = vrot.lane.b32.xlu0 %v1334_v3, %s1972_s3 }
0x2546   :  { %v1337_v61 = vpop.permute.xlu0 %1336 }
0x2547   :  { %v1339_v0 = vadd.f32 %v1337_v61, %v1329_v6 }
0x2549   :  { %1846 = vtanh.f32 %v1339_v0  ;;  %v1402_v26 = vrot.slane %v1339_v0, 6 }
0x2556   :  { %v1847_v2 = vpop.eup %1846 }
0x2557   :  { %1342 = vrot.lane.b32.xlu1 %v1847_v2, %s1964_s16 }
0x25c9   :  { %v1343_v4 = vpop.permute.xlu1 %1342 }
0x25ca   :  { %v1345_v5 = vmul.f32 %v1343_v4, %v1325_v60 }
0x25cc   :  { %v1346_v7 = vpack.c.bf16 %v1345_v5, %v1345_v5 }
0x25ce   :  { %v1348_v8 = vrot.slane %v1346_v7, 1 }
0x25d0   :  { %1349 = vrot.lane.b32.xlu0 %v1348_v8, %s1972_s3 }
0x2642   :  { %v1350_v10 = vpop.permute.xlu0 %1349 }
0x2643   :  { %1760 = vmatmul.mubr.msk.bf16.vlgmr.msra.gmra.mxu0 %vm186_vm2, %v1350_v10 }
0x2703   :  { %v1388_v11 = vpop.f32.mrf.mxu0 }
0x2704   :  { %v1395_v14 = vrot.slane %v1388_v11, 4 }
0x2705   :  { %v1761_v16 = vpop.f32.mrf.mxu0 }
0x2706   :  { %v1397_v17 = vadd.f32 %v1395_v14, %v2234_v19 }
0x2707   :  { %v1391_v18 = vpop.f32.mrf.mxu0 }
0x2708   :  { %1848 = vtanh.f32 %v1397_v17 }
0x2709   :  { %v1762_v20 = vpop.f32.mrf.mxu0 }
0x2715   :  { %v1849_v21 = vpop.eup %1848 }
0x2716   :  { %1406 = vrot.lane.b32.xlu1 %v1849_v21, %s1964_s16  ;;  %v1399_v22 = vmul.f32 0.5, %v1849_v21 }
0x2718   :  { %v1400_v23 = vadd.f32 0.5, %v1399_v22 }
0x271a   :  { %v1404_v27 = vmul.f32 %v1402_v26, %v1400_v23 }
0x2788   :  { %v1407_v24 = vpop.permute.xlu1 %1406 }
0x2789   :  { %v1409_v25 = vmul.f32 %v1407_v24, %v1400_v23 }
0x278b   :  { %1411 = vrot.lane.b32.xlu0 %v1409_v25, %s1972_s3 }
0x27fd   :  { %v1412_v28 = vpop.permute.xlu0 %1411 }
0x27fe   :  { %v1414_v29 = vadd.f32 %v1412_v28, %v1404_v27 }
0x2800   :  { %1850 = vtanh.f32 %v1414_v29  ;;  %v1477_v48 = vrot.slane %v1414_v29, 6 }
0x280d   :  { %v1851_v31 = vpop.eup %1850 }
0x280e   :  { %1417 = vrot.lane.b32.xlu1 %v1851_v31, %s1964_s16 }
0x2880   :  { %v1418_v32 = vpop.permute.xlu1 %1417 }
0x2881   :  { %v1420_v9 = vmul.f32 %v1418_v32, %v1400_v23 }
0x2883   :  { %v1421_v15 = vpack.c.bf16 %v1420_v9, %v1420_v9 }
0x2885   :  { %v1423_v33 = vrot.slane %v1421_v15, 2 }
0x2887   :  { %1424 = vrot.lane.b32.xlu0 %v1423_v33, %s1972_s3 }
0x28f9   :  { %v1425_v35 = vpop.permute.xlu0 %1424 }
0x28fa   :  { %1768 = vmatmul.mubr.msk.bf16.vlgmr.msra.gmra.mxu1 %vm186_vm2, %v1425_v35 }
0x29ba   :  { %v1463_v36 = vpop.f32.mrf.mxu1 }
0x29bb   :  { %v1470_v37 = vrot.slane %v1463_v36, 2 }
0x29bc   :  { %v1769_v38 = vpop.f32.mrf.mxu1 }
0x29bd   :  { %v1472_v39 = vadd.f32 %v1470_v37, %v2234_v19 }
0x29be   :  { %v1466_v40 = vpop.f32.mrf.mxu1 }
0x29bf   :  { %1852 = vtanh.f32 %v1472_v39 }
0x29c0   :  { %v1770_v41 = vpop.f32.mrf.mxu1 }
0x29cc   :  { %v1853_v42 = vpop.eup %1852 }
0x29cd   :  { %1481 = vrot.lane.b32.xlu1 %v1853_v42, %s1964_s16  ;;  %v1474_v43 = vmul.f32 0.5, %v1853_v42 }
0x29cf   :  { %v1475_v44 = vadd.f32 0.5, %v1474_v43 }
0x29d1   :  { %v1479_v19 = vmul.f32 %v1477_v48, %v1475_v44 }
0x2a3f   :  { %v1482_v45 = vpop.permute.xlu1 %1481 }
0x2a40   :  { %v1484_v46 = vmul.f32 %v1482_v45, %v1475_v44 }
0x2a42   :  { %1486 = vrot.lane.b32.xlu0 %v1484_v46, %s1972_s3 }
0x2a46   :  { %1502 = vrot.lane.b32.xlu0 %v1566_v47, %s1973_s17 }
0x2ab4   :  { %v1487_v49 = vpop.permute.xlu0 %1486 }
0x2ab5   :  { %v1489_v51 = vadd.f32 %v1487_v49, %v1479_v19 }
0x2ab7   :  { %1854 = vtanh.f32 %v1489_v51 }
0x2ab8   :  { %v1503_v53 = vpop.permute.xlu0 %1502 }
0x2ac4   :  { %v1855_v52 = vpop.eup %1854 }
0x2ac5   :  { %1492 = vrot.lane.b32.xlu1 %v1855_v52, %s1964_s16 }
0x2b37   :  { %v1493_v12 = vpop.permute.xlu1 %1492 }
0x2b38   :  { %v1495_v54 = vmul.f32 %v1493_v12, %v1475_v44 }
0x2b3a   :  { %v1505_v56 = vmul.f32 %v1503_v53, %v1495_v54 }
0x2b3c   :  { %1507 = vrot.lane.b32.xlu1 %v1505_v56, %s1972_s3 }
0x2bae   :  { %v1508_v57 = vpop.permute.xlu1 %1507 }
0x2baf   :  { %v1511_v58 = vsel %vm1510_vm7, %v1508_v57, 0.0 }
0x2bb0   :  { %1512 = vadd.xlane.f32.xlu0 %v1511_v58 }
0x2c39   :  { %v1513_v59 = vpop.xlane.xlu0 %1512 }
0x2c3a   :  { %v1521_v13 = vadd.f32 %v1567_v30, %v1513_v59 }
0x2c3c   :  { %1523 = vst.msk [vmem:[%s2325_s9 - $0x6] sm:$0xc0] %vm1522_vm8, %v1521_v13 }
0x2c3d   :  { %1528 = vsyncpa [#allocation5], 1 }
0x2c3e   :  { %1529 = vsyncpa [#allocation7], 1 }
0x2c3f   :  { %1530 = vsyncpa [#allocation10], 1 }

</bundles_post_ra>
